<compile_context>
chip_gen: v6e
topology: v6e:2x2x1
jax: 0.10.0
libtpu: 0.0.40
codegen_flags: <defaults>
</compile_context>

<pallas_src>
import numpy as np
import jax
import jax.numpy as jnp
from jax.experimental import pallas as pl
from jax.experimental.pallas import tpu as pltpu

# ----- static config (mirrors Wp_grurefine.__init__) -----
PRED_LEN = 6
USE_CMD = True
USE_PROJ = False                      # GRU refinement path (wp_proj unused)
GRU_USE_BOX = 1
WP_REFINE_INPUT_LAST = True
N_EMBD = 32                           # head.transformer.embed_dims (small demo)
QUERY = 64
HIDDEN = 64 + 1 + (1 if USE_CMD else 0)                                   # 66
IN_SIZE = 2 + 2 + (2 if WP_REFINE_INPUT_LAST else 0) + GRU_USE_BOX * 10   # 16

# lane-aligned (padded) layout
HP = 128                              # padded per-gate width
G3P = 3 * HP                          # 384: [r|z|n] gate blocks at 0/128/256
WBIG_W = G3P + HP                     # 512: dx (wp_output) columns at 384:386
FEAT = 2 + 2 * PRED_LEN + 10 * PRED_LEN                                   # 74
DATA_W = N_EMBD + 2 + FEAT                                                # 108
GI_W = PRED_LEN * G3P                                                     # 2304
BIAS_W = GI_W + WBIG_W + QUERY                                            # 2880
# TODO(synk): use_proj=True branch (wp_proj) is not exercised with this config.


def _gru_refine_kernel(data_ref, wfeat_ref, wihx_ref, whead_ref, wbig_ref,
                       bias_ref, out_ref, gi_scr):
    bs = data_ref.shape[0]
    data = data_ref[...]
    cls_emb = data[:, 0:N_EMBD]                       # (bs, 32)
    lc = data[:, N_EMBD:N_EMBD + 2]                   # (bs, 2) light|cmd
    feat = data[:, N_EMBD + 2:DATA_W]                 # (bs, 74) tp|x_last|bbox

    # h0 = [wp_head(cls_emb) | light | cmd | 0-pad] padded to 128 lanes
    bhead = bias_ref[:, GI_W + WBIG_W:GI_W + WBIG_W + QUERY]
    zh = jnp.dot(cls_emb, whead_ref[...],
                 preferred_element_type=jnp.float32) + bhead
    h = jnp.concatenate(
        [zh, lc, jnp.zeros((bs, HP - QUERY - 2), jnp.float32)], axis=1)

    # Non-recurrent input-gate contribution for ALL timesteps in ONE matmul
    # against the block-structured slab (b_ih folded in); staged in VMEM.
    b_feat = bias_ref[:, 0:GI_W]
    gi_scr[...] = jnp.dot(feat, wfeat_ref[...],
                          preferred_element_type=jnp.float32) + b_feat

    wihx0 = wihx_ref[0:1, :]          # rows of W_ih.T for the recurrent x cols
    wihx1 = wihx_ref[1:2, :]
    wbig = wbig_ref[...]              # (128, 512) = [W_hh.T | W_out.T], padded
    bbig = bias_ref[:, GI_W:GI_W + WBIG_W]            # (1, 512)

    x = jnp.zeros((bs, 2), jnp.float32)
    outs = []
    for t in range(PRED_LEN):         # unrolled: pred_len is small & static
        # One fused MXU pass per step: gh for the GRU update plus, in cols
        # 384:386, dx_{t-1} = W_out(h) + b_out (shifted output fusion).
        G = jnp.dot(h, wbig, preferred_element_type=jnp.float32) + bbig
        if t > 0:
            x = x + G[:, G3P:G3P + 2]                 # dx of the previous step
            outs.append(x)
        gi = gi_scr[:, t * G3P:(t + 1) * G3P]         # lane-aligned VMEM load
        if t > 0:                     # rank-2 VPU broadcast-FMA (x==0 at t==0)
            gi = gi + x[:, 0:1] * wihx0 + x[:, 1:2] * wihx1
        # PyTorch GRUCell gate order (r, z, n); b_hh_n stays inside r*(.)
        rz = jax.nn.sigmoid(gi[:, 0:2 * HP] + G[:, 0:2 * HP])   # fused r|z
        r = rz[:, 0:HP]
        zg = rz[:, HP:2 * HP]
        n = jnp.tanh(gi[:, 2 * HP:G3P] + r * G[:, 2 * HP:G3P])
        h = (1.0 - zg) * n + zg * h

    # final dx comes from one more fused pass (its gh part is unused)
    G = jnp.dot(h, wbig, preferred_element_type=jnp.float32) + bbig
    x = x + G[:, G3P:G3P + 2]
    outs.append(x)

    out = jnp.concatenate(outs, axis=1)               # (bs, 2*PRED_LEN)
    lane = jax.lax.broadcasted_iota(jnp.int32, out.shape, 1)
    off = jnp.where((lane & 1) == 0, jnp.float32(1.3), jnp.float32(0.0))
    out_ref[...] = out - off          # pred_wp[:, :, 0] -= 1.3, single store


def wp_grurefine_forward(x_last, cls_emb, tp_batch, light_batch, cmd_batch,
                         batch_npred_bbox, params):
    bs = cls_emb.shape[0]
    f32 = jnp.float32
    # single data slab; all reshapes are contiguous (no transposes / broadcasts)
    data = jnp.concatenate([
        cls_emb.astype(f32),                                       # 32
        light_batch.astype(f32),                                   # 1
        cmd_batch.astype(f32),                                     # 1
        tp_batch.astype(f32),                                      # 2
        x_last.reshape(bs, PRED_LEN * 2).astype(f32),              # 12
        batch_npred_bbox.reshape(bs, GRU_USE_BOX * PRED_LEN * 10).astype(f32),
    ], axis=1)                                                     # (bs, 108)

    out = pl.pallas_call(
        _gru_refine_kernel,
        out_shape=jax.ShapeDtypeStruct((bs, 2 * PRED_LEN), jnp.float32),
        in_specs=[pl.BlockSpec(memory_space=pltpu.MemorySpace.VMEM)] * 6,
        out_specs=pl.BlockSpec(memory_space=pltpu.MemorySpace.VMEM),
        scratch_shapes=[pltpu.VMEM((bs, GI_W), jnp.float32)],
    )(data, params['wfeat'], params['wihx'], params['whead_T'],
      params['wbig'], params['bias'])
    return out.reshape(bs, PRED_LEN, 2)                            # (bs, P, 2)


def _pad_gates(m):
    """(rows, 3*HIDDEN) with cols [r|z|n] -> (rows, 3*HP) gate-aligned."""
    m = np.asarray(m, np.float32)
    out = np.zeros(m.shape[:-1] + (G3P,), np.float32)
    for g in range(3):
        out[..., g * HP:g * HP + HIDDEN] = m[..., g * HIDDEN:(g + 1) * HIDDEN]
    return out


def pack_params(raw):
    """Wrapper/init-time packing into the fused, lane-aligned kernel operands."""
    wih_T = np.asarray(raw['w_ih'], np.float32).T        # (16, 198)
    wih_Tp = _pad_gates(wih_T)                           # (16, 384)
    wihx = wih_Tp[0:2]                                   # recurrent x columns

    # block-structured slab: (74, PRED_LEN*384); feat = [tp | x_last | bbox]
    wfeat = np.zeros((FEAT, GI_W), np.float32)
    for t in range(PRED_LEN):
        c0 = t * G3P
        wfeat[0:2, c0:c0 + G3P] = wih_Tp[2:4]                    # tp (all t)
        wfeat[2 + 2 * t:4 + 2 * t, c0:c0 + G3P] = wih_Tp[4:6]    # x_last[t]
        r0 = 2 + 2 * PRED_LEN + 10 * t
        wfeat[r0:r0 + 10, c0:c0 + G3P] = wih_Tp[6:16]            # bbox[t]
    bih_p = _pad_gates(np.asarray(raw['b_ih'], np.float32)[None])    # (1, 384)
    b_feat = np.tile(bih_p, (1, PRED_LEN))                           # (1, 2304)

    wbig = np.zeros((HP, WBIG_W), np.float32)            # [W_hh.T | W_out.T]
    wbig[:HIDDEN, :G3P] = _pad_gates(np.asarray(raw['w_hh'], np.float32).T)
    wbig[:HIDDEN, G3P:G3P + 2] = np.asarray(raw['w_out'], np.float32).T
    bbig = np.zeros((1, WBIG_W), np.float32)
    bbig[0, :G3P] = _pad_gates(np.asarray(raw['b_hh'], np.float32)[None])[0]
    bbig[0, G3P:G3P + 2] = np.asarray(raw['b_out'], np.float32)

    bias = np.concatenate(
        [b_feat, bbig, np.asarray(raw['b_head'], np.float32)[None]], axis=1)

    return {
        'wfeat': jnp.asarray(wfeat),                              # (74, 2304)
        'wihx': jnp.asarray(wihx),                                # (2, 384)
        'whead_T': jnp.asarray(np.asarray(raw['w_head'], np.float32).T),  # (32,64)
        'wbig': jnp.asarray(wbig),                                # (128, 512)
        'bias': jnp.asarray(bias),                                # (1, 2880)
    }


def init_params(key):
    """Deterministic init matching PyTorch default init shapes/semantics."""
    ks = jax.random.split(key, 8)

    def unif(k, shape, fan_in):
        bound = 1.0 / np.sqrt(fan_in)
        return jax.random.uniform(k, shape, jnp.float32, -bound, bound)

    raw = dict(
        w_head=unif(ks[0], (QUERY, N_EMBD), N_EMBD),   # wp_head: Linear(32, 64)
        b_head=unif(ks[1], (QUERY,), N_EMBD),
        w_ih=unif(ks[2], (3 * HIDDEN, IN_SIZE), HIDDEN),   # GRUCell
        w_hh=unif(ks[3], (3 * HIDDEN, HIDDEN), HIDDEN),
        b_ih=unif(ks[4], (3 * HIDDEN,), HIDDEN),
        b_hh=unif(ks[5], (3 * HIDDEN,), HIDDEN),
        w_out=unif(ks[6], (2, HIDDEN), HIDDEN),            # wp_output
        b_out=unif(ks[7], (2,), HIDDEN),
    )
    return pack_params(raw), raw


def ref_forward(x_last, cls_emb, tp, light, cmd, bbox, raw):
    """Plain-JAX port of the PyTorch forward, used only to check the kernel."""
    H = HIDDEN
    bs = cls_emb.shape[0]
    z = cls_emb @ raw['w_head'].T + raw['b_head']
    z = (jnp.concatenate([z, light, cmd], axis=1) if USE_CMD
         else jnp.concatenate([z, light], axis=1))
    x = jnp.zeros((bs, 2), jnp.float32)
    outs = []
    for t in range(PRED_LEN):
        x_in = jnp.concatenate([x, tp], axis=1)
        if WP_REFINE_INPUT_LAST:
            x_in = jnp.concatenate([x_in, x_last[:, t]], axis=1)
        if GRU_USE_BOX:
            x_in = jnp.concatenate([x_in, bbox[:, :, t].reshape(bs, -1)], axis=1)
        gi = x_in @ raw['w_ih'].T + raw['b_ih']
        gh = z @ raw['w_hh'].T + raw['b_hh']
        r = jax.nn.sigmoid(gi[:, :H] + gh[:, :H])
        zz = jax.nn.sigmoid(gi[:, H:2 * H] + gh[:, H:2 * H])
        n = jnp.tanh(gi[:, 2 * H:] + r * gh[:, 2 * H:])
        z = (1.0 - zz) * n + zz * z
        x = z @ raw['w_out'].T + raw['b_out'] + x
        outs.append(x)
    pred = jnp.stack(outs, axis=1)
    return pred.at[:, :, 0].add(-1.3)


if __name__ == "__main__":
    key = jax.random.PRNGKey(0)
    kp, kd = jax.random.split(key)
    params, raw = init_params(kp)

    bs = 8   # per-step slicing is lane-based now, so bs need not be 8-aligned
    ks = jax.random.split(kd, 6)
    x_last = jax.random.normal(ks[0], (bs, PRED_LEN, 2), jnp.float32)
    cls_emb = jax.random.normal(ks[1], (bs, N_EMBD), jnp.float32)
    tp = jax.random.normal(ks[2], (bs, 2), jnp.float32)
    light = jax.random.normal(ks[3], (bs, 1), jnp.float32)
    cmd = jax.random.normal(ks[4], (bs, 1), jnp.float32)
    bbox = jax.random.normal(ks[5], (bs, GRU_USE_BOX, PRED_LEN, 10), jnp.float32)

    fwd = jax.jit(wp_grurefine_forward)
    out = fwd(x_last, cls_emb, tp, light, cmd, bbox, params)
    out = jax.block_until_ready(out)

    ref = ref_forward(x_last, cls_emb, tp, light, cmd, bbox, raw)
    assert out.shape == (bs, PRED_LEN, 2)
    np.testing.assert_allclose(np.asarray(out), np.asarray(ref),
                               rtol=1e-4, atol=1e-4)
    print("KERNEL_OK")
</pallas_src>

<mosaic_0001>
module attributes {stable_mosaic.version = 11 : i64} {
  func.func @_gru_refine_kernel(%arg0: memref<8x108xf32, #tpu.memory_space<vmem>>, %arg1: memref<74x2304xf32, #tpu.memory_space<vmem>>, %arg2: memref<2x384xf32, #tpu.memory_space<vmem>>, %arg3: memref<32x64xf32, #tpu.memory_space<vmem>>, %arg4: memref<128x512xf32, #tpu.memory_space<vmem>>, %arg5: memref<1x2880xf32, #tpu.memory_space<vmem>>, %arg6: memref<8x12xf32, #tpu.memory_space<vmem>>, %arg7: memref<8x2304xf32, #tpu.memory_space<vmem>>) attributes {dimension_semantics = [], scalar_prefetch = 0 : i64, scratch_operands = 1 : i64, tpu.core_type = #tpu.core_type<tc>} {
    %c0 = arith.constant 0 : index
    %c0_0 = arith.constant 0 : index
    %0 = vector.load %arg0[%c0, %c0_0] : memref<8x108xf32, #tpu.memory_space<vmem>>, vector<8x108xf32>
    %1 = vector.extract_strided_slice %0 {offsets = [0, 0], sizes = [8, 32], strides = [1, 1]} : vector<8x108xf32> to vector<8x32xf32>
    %2 = vector.extract_strided_slice %0 {offsets = [0, 32], sizes = [8, 2], strides = [1, 1]} : vector<8x108xf32> to vector<8x2xf32>
    %3 = vector.extract_strided_slice %0 {offsets = [0, 34], sizes = [8, 74], strides = [1, 1]} : vector<8x108xf32> to vector<8x74xf32>
    %c0_1 = arith.constant 0 : index
    %c2816 = arith.constant 2816 : index
    %4 = vector.load %arg5[%c0_1, %c2816] : memref<1x2880xf32, #tpu.memory_space<vmem>>, vector<1x64xf32>
    %c0_2 = arith.constant 0 : index
    %c0_3 = arith.constant 0 : index
    %5 = vector.load %arg3[%c0_2, %c0_3] : memref<32x64xf32, #tpu.memory_space<vmem>>, vector<32x64xf32>
    %cst = arith.constant dense<0.000000e+00> : vector<8x64xf32>
    %6 = tpu.matmul %1, %5, %cst {dimension_numbers = #tpu.dot_dimension_numbers<[1], [0], [0], [1], [0, 0, 1, 1], [], []>} : vector<8x32xf32>, vector<32x64xf32>, vector<8x64xf32> -> vector<8x64xf32>
    %7 = vector.broadcast %4 : vector<1x64xf32> to vector<8x64xf32>
    %8 = arith.addf %6, %7 : vector<8x64xf32>
    %cst_4 = arith.constant 0.000000e+00 : f32
    %9 = vector.broadcast %cst_4 : f32 to vector<8x62xf32>
    %10 = tpu.concatenate %8, %2, %9 in 1 : vector<8x64xf32>, vector<8x2xf32>, vector<8x62xf32> -> vector<8x128xf32>
    %c0_5 = arith.constant 0 : index
    %c0_6 = arith.constant 0 : index
    %11 = vector.load %arg5[%c0_5, %c0_6] : memref<1x2880xf32, #tpu.memory_space<vmem>>, vector<1x2304xf32>
    %c0_7 = arith.constant 0 : index
    %c0_8 = arith.constant 0 : index
    %12 = vector.load %arg1[%c0_7, %c0_8] : memref<74x2304xf32, #tpu.memory_space<vmem>>, vector<74x2304xf32>
    %cst_9 = arith.constant dense<0.000000e+00> : vector<8x2304xf32>
    %13 = tpu.matmul %3, %12, %cst_9 {dimension_numbers = #tpu.dot_dimension_numbers<[1], [0], [0], [1], [0, 0, 1, 1], [], []>} : vector<8x74xf32>, vector<74x2304xf32>, vector<8x2304xf32> -> vector<8x2304xf32>
    %14 = vector.broadcast %11 : vector<1x2304xf32> to vector<8x2304xf32>
    %15 = arith.addf %13, %14 : vector<8x2304xf32>
    %c0_10 = arith.constant 0 : index
    %c0_11 = arith.constant 0 : index
    %16 = vector.load %arg7[%c0_10, %c0_11] : memref<8x2304xf32, #tpu.memory_space<vmem>>, vector<8x2304xf32>
    tpu.vector_store %arg7[%c0_10, %c0_11], %15 {strides = array<i32>} : memref<8x2304xf32, #tpu.memory_space<vmem>>, vector<8x2304xf32>,
    %c0_12 = arith.constant 0 : index
    %c0_13 = arith.constant 0 : index
    %17 = vector.load %arg2[%c0_12, %c0_13] : memref<2x384xf32, #tpu.memory_space<vmem>>, vector<1x384xf32>
    %c1 = arith.constant 1 : index
    %c0_14 = arith.constant 0 : index
    %18 = vector.load %arg2[%c1, %c0_14] : memref<2x384xf32, #tpu.memory_space<vmem>>, vector<1x384xf32>
    %c0_15 = arith.constant 0 : index
    %c0_16 = arith.constant 0 : index
    %19 = vector.load %arg4[%c0_15, %c0_16] : memref<128x512xf32, #tpu.memory_space<vmem>>, vector<128x512xf32>
    %c0_17 = arith.constant 0 : index
    %c2304 = arith.constant 2304 : index
    %20 = vector.load %arg5[%c0_17, %c2304] : memref<1x2880xf32, #tpu.memory_space<vmem>>, vector<1x512xf32>
    %cst_18 = arith.constant 0.000000e+00 : f32
    %21 = vector.broadcast %cst_18 : f32 to vector<8x2xf32>
    %cst_19 = arith.constant dense<0.000000e+00> : vector<8x512xf32>
    %22 = tpu.matmul %10, %19, %cst_19 {dimension_numbers = #tpu.dot_dimension_numbers<[1], [0], [0], [1], [0, 0, 1, 1], [], []>} : vector<8x128xf32>, vector<128x512xf32>, vector<8x512xf32> -> vector<8x512xf32>
    %23 = vector.broadcast %20 : vector<1x512xf32> to vector<8x512xf32>
    %24 = arith.addf %22, %23 : vector<8x512xf32>
    %c0_20 = arith.constant 0 : index
    %c0_21 = arith.constant 0 : index
    %25 = vector.load %arg7[%c0_20, %c0_21] : memref<8x2304xf32, #tpu.memory_space<vmem>>, vector<8x384xf32>
    %26 = vector.extract_strided_slice %25 {offsets = [0, 0], sizes = [8, 256], strides = [1, 1]} : vector<8x384xf32> to vector<8x256xf32>
    %27 = vector.extract_strided_slice %24 {offsets = [0, 0], sizes = [8, 256], strides = [1, 1]} : vector<8x512xf32> to vector<8x256xf32>
    %28 = arith.addf %26, %27 : vector<8x256xf32>
    %29 = arith.negf %28 : vector<8x256xf32>
    %30 = math.exp %29 : vector<8x256xf32>
    %cst_22 = arith.constant 1.000000e+00 : f32
    %31 = vector.broadcast %cst_22 : f32 to vector<8x256xf32>
    %32 = arith.addf %31, %30 : vector<8x256xf32>
    %33 = arith.divf %31, %32 : vector<8x256xf32>
    %34 = vector.extract_strided_slice %33 {offsets = [0, 0], sizes = [8, 128], strides = [1, 1]} : vector<8x256xf32> to vector<8x128xf32>
    %35 = vector.extract_strided_slice %33 {offsets = [0, 128], sizes = [8, 128], strides = [1, 1]} : vector<8x256xf32> to vector<8x128xf32>
    %36 = vector.extract_strided_slice %25 {offsets = [0, 256], sizes = [8, 128], strides = [1, 1]} : vector<8x384xf32> to vector<8x128xf32>
    %37 = vector.extract_strided_slice %24 {offsets = [0, 256], sizes = [8, 128], strides = [1, 1]} : vector<8x512xf32> to vector<8x128xf32>
    %38 = arith.mulf %34, %37 : vector<8x128xf32>
    %39 = arith.addf %36, %38 : vector<8x128xf32>
    %40 = math.tanh %39 : vector<8x128xf32>
    %cst_23 = arith.constant 1.000000e+00 : f32
    %41 = vector.broadcast %cst_23 : f32 to vector<8x128xf32>
    %42 = arith.subf %41, %35 : vector<8x128xf32>
    %43 = arith.mulf %42, %40 : vector<8x128xf32>
    %44 = arith.mulf %35, %10 : vector<8x128xf32>
    %45 = arith.addf %43, %44 : vector<8x128xf32>
    %cst_24 = arith.constant dense<0.000000e+00> : vector<8x512xf32>
    %46 = tpu.matmul %45, %19, %cst_24 {dimension_numbers = #tpu.dot_dimension_numbers<[1], [0], [0], [1], [0, 0, 1, 1], [], []>} : vector<8x128xf32>, vector<128x512xf32>, vector<8x512xf32> -> vector<8x512xf32>
    %47 = vector.broadcast %20 : vector<1x512xf32> to vector<8x512xf32>
    %48 = arith.addf %46, %47 : vector<8x512xf32>
    %49 = vector.extract_strided_slice %48 {offsets = [0, 384], sizes = [8, 2], strides = [1, 1]} : vector<8x512xf32> to vector<8x2xf32>
    %50 = arith.addf %21, %49 : vector<8x2xf32>
    %c0_25 = arith.constant 0 : index
    %c384 = arith.constant 384 : index
    %51 = vector.load %arg7[%c0_25, %c384] : memref<8x2304xf32, #tpu.memory_space<vmem>>, vector<8x384xf32>
    %52 = vector.extract_strided_slice %50 {offsets = [0, 0], sizes = [8, 1], strides = [1, 1]} : vector<8x2xf32> to vector<8x1xf32>
    %53 = vector.broadcast %52 : vector<8x1xf32> to vector<8x384xf32>
    %54 = vector.broadcast %17 : vector<1x384xf32> to vector<8x384xf32>
    %55 = arith.mulf %53, %54 : vector<8x384xf32>
    %56 = arith.addf %51, %55 : vector<8x384xf32>
    %57 = vector.extract_strided_slice %50 {offsets = [0, 1], sizes = [8, 1], strides = [1, 1]} : vector<8x2xf32> to vector<8x1xf32>
    %58 = vector.broadcast %57 : vector<8x1xf32> to vector<8x384xf32>
    %59 = vector.broadcast %18 : vector<1x384xf32> to vector<8x384xf32>
    %60 = arith.mulf %58, %59 : vector<8x384xf32>
    %61 = arith.addf %56, %60 : vector<8x384xf32>
    %62 = vector.extract_strided_slice %61 {offsets = [0, 0], sizes = [8, 256], strides = [1, 1]} : vector<8x384xf32> to vector<8x256xf32>
    %63 = vector.extract_strided_slice %48 {offsets = [0, 0], sizes = [8, 256], strides = [1, 1]} : vector<8x512xf32> to vector<8x256xf32>
    %64 = arith.addf %62, %63 : vector<8x256xf32>
    %65 = arith.negf %64 : vector<8x256xf32>
    %66 = math.exp %65 : vector<8x256xf32>
    %cst_26 = arith.constant 1.000000e+00 : f32
    %67 = vector.broadcast %cst_26 : f32 to vector<8x256xf32>
    %68 = arith.addf %67, %66 : vector<8x256xf32>
    %69 = arith.divf %67, %68 : vector<8x256xf32>
    %70 = vector.extract_strided_slice %69 {offsets = [0, 0], sizes = [8, 128], strides = [1, 1]} : vector<8x256xf32> to vector<8x128xf32>
    %71 = vector.extract_strided_slice %69 {offsets = [0, 128], sizes = [8, 128], strides = [1, 1]} : vector<8x256xf32> to vector<8x128xf32>
    %72 = vector.extract_strided_slice %61 {offsets = [0, 256], sizes = [8, 128], strides = [1, 1]} : vector<8x384xf32> to vector<8x128xf32>
    %73 = vector.extract_strided_slice %48 {offsets = [0, 256], sizes = [8, 128], strides = [1, 1]} : vector<8x512xf32> to vector<8x128xf32>
    %74 = arith.mulf %70, %73 : vector<8x128xf32>
    %75 = arith.addf %72, %74 : vector<8x128xf32>
    %76 = math.tanh %75 : vector<8x128xf32>
    %cst_27 = arith.constant 1.000000e+00 : f32
    %77 = vector.broadcast %cst_27 : f32 to vector<8x128xf32>
    %78 = arith.subf %77, %71 : vector<8x128xf32>
    %79 = arith.mulf %78, %76 : vector<8x128xf32>
    %80 = arith.mulf %71, %45 : vector<8x128xf32>
    %81 = arith.addf %79, %80 : vector<8x128xf32>
    %cst_28 = arith.constant dense<0.000000e+00> : vector<8x512xf32>
    %82 = tpu.matmul %81, %19, %cst_28 {dimension_numbers = #tpu.dot_dimension_numbers<[1], [0], [0], [1], [0, 0, 1, 1], [], []>} : vector<8x128xf32>, vector<128x512xf32>, vector<8x512xf32> -> vector<8x512xf32>
    %83 = vector.broadcast %20 : vector<1x512xf32> to vector<8x512xf32>
    %84 = arith.addf %82, %83 : vector<8x512xf32>
    %85 = vector.extract_strided_slice %84 {offsets = [0, 384], sizes = [8, 2], strides = [1, 1]} : vector<8x512xf32> to vector<8x2xf32>
    %86 = arith.addf %50, %85 : vector<8x2xf32>
    %c0_29 = arith.constant 0 : index
    %c768 = arith.constant 768 : index
    %87 = vector.load %arg7[%c0_29, %c768] : memref<8x2304xf32, #tpu.memory_space<vmem>>, vector<8x384xf32>
    %88 = vector.extract_strided_slice %86 {offsets = [0, 0], sizes = [8, 1], strides = [1, 1]} : vector<8x2xf32> to vector<8x1xf32>
    %89 = vector.broadcast %88 : vector<8x1xf32> to vector<8x384xf32>
    %90 = vector.broadcast %17 : vector<1x384xf32> to vector<8x384xf32>
    %91 = arith.mulf %89, %90 : vector<8x384xf32>
    %92 = arith.addf %87, %91 : vector<8x384xf32>
    %93 = vector.extract_strided_slice %86 {offsets = [0, 1], sizes = [8, 1], strides = [1, 1]} : vector<8x2xf32> to vector<8x1xf32>
    %94 = vector.broadcast %93 : vector<8x1xf32> to vector<8x384xf32>
    %95 = vector.broadcast %18 : vector<1x384xf32> to vector<8x384xf32>
    %96 = arith.mulf %94, %95 : vector<8x384xf32>
    %97 = arith.addf %92, %96 : vector<8x384xf32>
    %98 = vector.extract_strided_slice %97 {offsets = [0, 0], sizes = [8, 256], strides = [1, 1]} : vector<8x384xf32> to vector<8x256xf32>
    %99 = vector.extract_strided_slice %84 {offsets = [0, 0], sizes = [8, 256], strides = [1, 1]} : vector<8x512xf32> to vector<8x256xf32>
    %100 = arith.addf %98, %99 : vector<8x256xf32>
    %101 = arith.negf %100 : vector<8x256xf32>
    %102 = math.exp %101 : vector<8x256xf32>
    %cst_30 = arith.constant 1.000000e+00 : f32
    %103 = vector.broadcast %cst_30 : f32 to vector<8x256xf32>
    %104 = arith.addf %103, %102 : vector<8x256xf32>
    %105 = arith.divf %103, %104 : vector<8x256xf32>
    %106 = vector.extract_strided_slice %105 {offsets = [0, 0], sizes = [8, 128], strides = [1, 1]} : vector<8x256xf32> to vector<8x128xf32>
    %107 = vector.extract_strided_slice %105 {offsets = [0, 128], sizes = [8, 128], strides = [1, 1]} : vector<8x256xf32> to vector<8x128xf32>
    %108 = vector.extract_strided_slice %97 {offsets = [0, 256], sizes = [8, 128], strides = [1, 1]} : vector<8x384xf32> to vector<8x128xf32>
    %109 = vector.extract_strided_slice %84 {offsets = [0, 256], sizes = [8, 128], strides = [1, 1]} : vector<8x512xf32> to vector<8x128xf32>
    %110 = arith.mulf %106, %109 : vector<8x128xf32>
    %111 = arith.addf %108, %110 : vector<8x128xf32>
    %112 = math.tanh %111 : vector<8x128xf32>
    %cst_31 = arith.constant 1.000000e+00 : f32
    %113 = vector.broadcast %cst_31 : f32 to vector<8x128xf32>
    %114 = arith.subf %113, %107 : vector<8x128xf32>
    %115 = arith.mulf %114, %112 : vector<8x128xf32>
    %116 = arith.mulf %107, %81 : vector<8x128xf32>
    %117 = arith.addf %115, %116 : vector<8x128xf32>
    %cst_32 = arith.constant dense<0.000000e+00> : vector<8x512xf32>
    %118 = tpu.matmul %117, %19, %cst_32 {dimension_numbers = #tpu.dot_dimension_numbers<[1], [0], [0], [1], [0, 0, 1, 1], [], []>} : vector<8x128xf32>, vector<128x512xf32>, vector<8x512xf32> -> vector<8x512xf32>
    %119 = vector.broadcast %20 : vector<1x512xf32> to vector<8x512xf32>
    %120 = arith.addf %118, %119 : vector<8x512xf32>
    %121 = vector.extract_strided_slice %120 {offsets = [0, 384], sizes = [8, 2], strides = [1, 1]} : vector<8x512xf32> to vector<8x2xf32>
    %122 = arith.addf %86, %121 : vector<8x2xf32>
    %c0_33 = arith.constant 0 : index
    %c1152 = arith.constant 1152 : index
    %123 = vector.load %arg7[%c0_33, %c1152] : memref<8x2304xf32, #tpu.memory_space<vmem>>, vector<8x384xf32>
    %124 = vector.extract_strided_slice %122 {offsets = [0, 0], sizes = [8, 1], strides = [1, 1]} : vector<8x2xf32> to vector<8x1xf32>
    %125 = vector.broadcast %124 : vector<8x1xf32> to vector<8x384xf32>
    %126 = vector.broadcast %17 : vector<1x384xf32> to vector<8x384xf32>
    %127 = arith.mulf %125, %126 : vector<8x384xf32>
    %128 = arith.addf %123, %127 : vector<8x384xf32>
    %129 = vector.extract_strided_slice %122 {offsets = [0, 1], sizes = [8, 1], strides = [1, 1]} : vector<8x2xf32> to vector<8x1xf32>
    %130 = vector.broadcast %129 : vector<8x1xf32> to vector<8x384xf32>
    %131 = vector.broadcast %18 : vector<1x384xf32> to vector<8x384xf32>
    %132 = arith.mulf %130, %131 : vector<8x384xf32>
    %133 = arith.addf %128, %132 : vector<8x384xf32>
    %134 = vector.extract_strided_slice %133 {offsets = [0, 0], sizes = [8, 256], strides = [1, 1]} : vector<8x384xf32> to vector<8x256xf32>
    %135 = vector.extract_strided_slice %120 {offsets = [0, 0], sizes = [8, 256], strides = [1, 1]} : vector<8x512xf32> to vector<8x256xf32>
    %136 = arith.addf %134, %135 : vector<8x256xf32>
    %137 = arith.negf %136 : vector<8x256xf32>
    %138 = math.exp %137 : vector<8x256xf32>
    %cst_34 = arith.constant 1.000000e+00 : f32
    %139 = vector.broadcast %cst_34 : f32 to vector<8x256xf32>
    %140 = arith.addf %139, %138 : vector<8x256xf32>
    %141 = arith.divf %139, %140 : vector<8x256xf32>
    %142 = vector.extract_strided_slice %141 {offsets = [0, 0], sizes = [8, 128], strides = [1, 1]} : vector<8x256xf32> to vector<8x128xf32>
    %143 = vector.extract_strided_slice %141 {offsets = [0, 128], sizes = [8, 128], strides = [1, 1]} : vector<8x256xf32> to vector<8x128xf32>
    %144 = vector.extract_strided_slice %133 {offsets = [0, 256], sizes = [8, 128], strides = [1, 1]} : vector<8x384xf32> to vector<8x128xf32>
    %145 = vector.extract_strided_slice %120 {offsets = [0, 256], sizes = [8, 128], strides = [1, 1]} : vector<8x512xf32> to vector<8x128xf32>
    %146 = arith.mulf %142, %145 : vector<8x128xf32>
    %147 = arith.addf %144, %146 : vector<8x128xf32>
    %148 = math.tanh %147 : vector<8x128xf32>
    %cst_35 = arith.constant 1.000000e+00 : f32
    %149 = vector.broadcast %cst_35 : f32 to vector<8x128xf32>
    %150 = arith.subf %149, %143 : vector<8x128xf32>
    %151 = arith.mulf %150, %148 : vector<8x128xf32>
    %152 = arith.mulf %143, %117 : vector<8x128xf32>
    %153 = arith.addf %151, %152 : vector<8x128xf32>
    %cst_36 = arith.constant dense<0.000000e+00> : vector<8x512xf32>
    %154 = tpu.matmul %153, %19, %cst_36 {dimension_numbers = #tpu.dot_dimension_numbers<[1], [0], [0], [1], [0, 0, 1, 1], [], []>} : vector<8x128xf32>, vector<128x512xf32>, vector<8x512xf32> -> vector<8x512xf32>
    %155 = vector.broadcast %20 : vector<1x512xf32> to vector<8x512xf32>
    %156 = arith.addf %154, %155 : vector<8x512xf32>
    %157 = vector.extract_strided_slice %156 {offsets = [0, 384], sizes = [8, 2], strides = [1, 1]} : vector<8x512xf32> to vector<8x2xf32>
    %158 = arith.addf %122, %157 : vector<8x2xf32>
    %c0_37 = arith.constant 0 : index
    %c1536 = arith.constant 1536 : index
    %159 = vector.load %arg7[%c0_37, %c1536] : memref<8x2304xf32, #tpu.memory_space<vmem>>, vector<8x384xf32>
    %160 = vector.extract_strided_slice %158 {offsets = [0, 0], sizes = [8, 1], strides = [1, 1]} : vector<8x2xf32> to vector<8x1xf32>
    %161 = vector.broadcast %160 : vector<8x1xf32> to vector<8x384xf32>
    %162 = vector.broadcast %17 : vector<1x384xf32> to vector<8x384xf32>
    %163 = arith.mulf %161, %162 : vector<8x384xf32>
    %164 = arith.addf %159, %163 : vector<8x384xf32>
    %165 = vector.extract_strided_slice %158 {offsets = [0, 1], sizes = [8, 1], strides = [1, 1]} : vector<8x2xf32> to vector<8x1xf32>
    %166 = vector.broadcast %165 : vector<8x1xf32> to vector<8x384xf32>
    %167 = vector.broadcast %18 : vector<1x384xf32> to vector<8x384xf32>
    %168 = arith.mulf %166, %167 : vector<8x384xf32>
    %169 = arith.addf %164, %168 : vector<8x384xf32>
    %170 = vector.extract_strided_slice %169 {offsets = [0, 0], sizes = [8, 256], strides = [1, 1]} : vector<8x384xf32> to vector<8x256xf32>
    %171 = vector.extract_strided_slice %156 {offsets = [0, 0], sizes = [8, 256], strides = [1, 1]} : vector<8x512xf32> to vector<8x256xf32>
    %172 = arith.addf %170, %171 : vector<8x256xf32>
    %173 = arith.negf %172 : vector<8x256xf32>
    %174 = math.exp %173 : vector<8x256xf32>
    %cst_38 = arith.constant 1.000000e+00 : f32
    %175 = vector.broadcast %cst_38 : f32 to vector<8x256xf32>
    %176 = arith.addf %175, %174 : vector<8x256xf32>
    %177 = arith.divf %175, %176 : vector<8x256xf32>
    %178 = vector.extract_strided_slice %177 {offsets = [0, 0], sizes = [8, 128], strides = [1, 1]} : vector<8x256xf32> to vector<8x128xf32>
    %179 = vector.extract_strided_slice %177 {offsets = [0, 128], sizes = [8, 128], strides = [1, 1]} : vector<8x256xf32> to vector<8x128xf32>
    %180 = vector.extract_strided_slice %169 {offsets = [0, 256], sizes = [8, 128], strides = [1, 1]} : vector<8x384xf32> to vector<8x128xf32>
    %181 = vector.extract_strided_slice %156 {offsets = [0, 256], sizes = [8, 128], strides = [1, 1]} : vector<8x512xf32> to vector<8x128xf32>
    %182 = arith.mulf %178, %181 : vector<8x128xf32>
    %183 = arith.addf %180, %182 : vector<8x128xf32>
    %184 = math.tanh %183 : vector<8x128xf32>
    %cst_39 = arith.constant 1.000000e+00 : f32
    %185 = vector.broadcast %cst_39 : f32 to vector<8x128xf32>
    %186 = arith.subf %185, %179 : vector<8x128xf32>
    %187 = arith.mulf %186, %184 : vector<8x128xf32>
    %188 = arith.mulf %179, %153 : vector<8x128xf32>
    %189 = arith.addf %187, %188 : vector<8x128xf32>
    %cst_40 = arith.constant dense<0.000000e+00> : vector<8x512xf32>
    %190 = tpu.matmul %189, %19, %cst_40 {dimension_numbers = #tpu.dot_dimension_numbers<[1], [0], [0], [1], [0, 0, 1, 1], [], []>} : vector<8x128xf32>, vector<128x512xf32>, vector<8x512xf32> -> vector<8x512xf32>
    %191 = vector.broadcast %20 : vector<1x512xf32> to vector<8x512xf32>
    %192 = arith.addf %190, %191 : vector<8x512xf32>
    %193 = vector.extract_strided_slice %192 {offsets = [0, 384], sizes = [8, 2], strides = [1, 1]} : vector<8x512xf32> to vector<8x2xf32>
    %194 = arith.addf %158, %193 : vector<8x2xf32>
    %c0_41 = arith.constant 0 : index
    %c1920 = arith.constant 1920 : index
    %195 = vector.load %arg7[%c0_41, %c1920] : memref<8x2304xf32, #tpu.memory_space<vmem>>, vector<8x384xf32>
    %196 = vector.extract_strided_slice %194 {offsets = [0, 0], sizes = [8, 1], strides = [1, 1]} : vector<8x2xf32> to vector<8x1xf32>
    %197 = vector.broadcast %196 : vector<8x1xf32> to vector<8x384xf32>
    %198 = vector.broadcast %17 : vector<1x384xf32> to vector<8x384xf32>
    %199 = arith.mulf %197, %198 : vector<8x384xf32>
    %200 = arith.addf %195, %199 : vector<8x384xf32>
    %201 = vector.extract_strided_slice %194 {offsets = [0, 1], sizes = [8, 1], strides = [1, 1]} : vector<8x2xf32> to vector<8x1xf32>
    %202 = vector.broadcast %201 : vector<8x1xf32> to vector<8x384xf32>
    %203 = vector.broadcast %18 : vector<1x384xf32> to vector<8x384xf32>
    %204 = arith.mulf %202, %203 : vector<8x384xf32>
    %205 = arith.addf %200, %204 : vector<8x384xf32>
    %206 = vector.extract_strided_slice %205 {offsets = [0, 0], sizes = [8, 256], strides = [1, 1]} : vector<8x384xf32> to vector<8x256xf32>
    %207 = vector.extract_strided_slice %192 {offsets = [0, 0], sizes = [8, 256], strides = [1, 1]} : vector<8x512xf32> to vector<8x256xf32>
    %208 = arith.addf %206, %207 : vector<8x256xf32>
    %209 = arith.negf %208 : vector<8x256xf32>
    %210 = math.exp %209 : vector<8x256xf32>
    %cst_42 = arith.constant 1.000000e+00 : f32
    %211 = vector.broadcast %cst_42 : f32 to vector<8x256xf32>
    %212 = arith.addf %211, %210 : vector<8x256xf32>
    %213 = arith.divf %211, %212 : vector<8x256xf32>
    %214 = vector.extract_strided_slice %213 {offsets = [0, 0], sizes = [8, 128], strides = [1, 1]} : vector<8x256xf32> to vector<8x128xf32>
    %215 = vector.extract_strided_slice %213 {offsets = [0, 128], sizes = [8, 128], strides = [1, 1]} : vector<8x256xf32> to vector<8x128xf32>
    %216 = vector.extract_strided_slice %205 {offsets = [0, 256], sizes = [8, 128], strides = [1, 1]} : vector<8x384xf32> to vector<8x128xf32>
    %217 = vector.extract_strided_slice %192 {offsets = [0, 256], sizes = [8, 128], strides = [1, 1]} : vector<8x512xf32> to vector<8x128xf32>
    %218 = arith.mulf %214, %217 : vector<8x128xf32>
    %219 = arith.addf %216, %218 : vector<8x128xf32>
    %220 = math.tanh %219 : vector<8x128xf32>
    %cst_43 = arith.constant 1.000000e+00 : f32
    %221 = vector.broadcast %cst_43 : f32 to vector<8x128xf32>
    %222 = arith.subf %221, %215 : vector<8x128xf32>
    %223 = arith.mulf %222, %220 : vector<8x128xf32>
    %224 = arith.mulf %215, %189 : vector<8x128xf32>
    %225 = arith.addf %223, %224 : vector<8x128xf32>
    %cst_44 = arith.constant dense<0.000000e+00> : vector<8x512xf32>
    %226 = tpu.matmul %225, %19, %cst_44 {dimension_numbers = #tpu.dot_dimension_numbers<[1], [0], [0], [1], [0, 0, 1, 1], [], []>} : vector<8x128xf32>, vector<128x512xf32>, vector<8x512xf32> -> vector<8x512xf32>
    %227 = vector.broadcast %20 : vector<1x512xf32> to vector<8x512xf32>
    %228 = arith.addf %226, %227 : vector<8x512xf32>
    %229 = vector.extract_strided_slice %228 {offsets = [0, 384], sizes = [8, 2], strides = [1, 1]} : vector<8x512xf32> to vector<8x2xf32>
    %230 = arith.addf %194, %229 : vector<8x2xf32>
    %231 = tpu.concatenate %50, %86, %122, %158, %194, %230 in 1 : vector<8x2xf32>, vector<8x2xf32>, vector<8x2xf32>, vector<8x2xf32>, vector<8x2xf32>, vector<8x2xf32> -> vector<8x12xf32>
    %232 = tpu.iota {dimensions = array<i32: 1>} : vector<8x12xi32>
    %c1_i32 = arith.constant 1 : i32
    %233 = vector.broadcast %c1_i32 : i32 to vector<8x12xi32>
    %234 = arith.andi %232, %233 : vector<8x12xi32>
    %c0_i32 = arith.constant 0 : i32
    %235 = vector.broadcast %c0_i32 : i32 to vector<8x12xi32>
    %236 = arith.cmpi eq, %234, %235 : vector<8x12xi32>
    %cst_45 = arith.constant 1.300000e+00 : f32
    %cst_46 = arith.constant 0.000000e+00 : f32
    %237 = vector.broadcast %cst_45 : f32 to vector<8x12xf32>
    %238 = vector.broadcast %cst_46 : f32 to vector<8x12xf32>
    %239 = arith.select %236, %237, %238 : vector<8x12xi1>, vector<8x12xf32>
    %240 = arith.subf %231, %239 : vector<8x12xf32>
    %c0_47 = arith.constant 0 : index
    %c0_48 = arith.constant 0 : index
    %241 = vector.load %arg6[%c0_47, %c0_48] : memref<8x12xf32, #tpu.memory_space<vmem>>, vector<8x12xf32>
    tpu.vector_store %arg6[%c0_47, %c0_48], %240 {strides = array<i32>} : memref<8x12xf32, #tpu.memory_space<vmem>>, vector<8x12xf32>,
    return
  }
}

</mosaic_0001>

<bundles_post_ra>
// kernel: wp_grurefine_forward.1
= control target key start
LH: loop header
LB: loop body
LE: loop exit
PB: predicated region body
PF: predicated region fallthrough
CT: control target
= control target key end

     0   :  { %11 = vsyncpa [#allocation4], 0  ;;  %s3838_s0 = inlined_call_operand.vmem [shape: f32[8,108], index: 0, kind: input, shape index: {}]   ;;  %s3839_s1 = inlined_call_operand.hbm [shape: f32[74,2304], index: 1, kind: input, shape index: {}]   ;;  %s3840_s2 = inlined_call_operand.vmem [shape: f32[2,384], index: 2, kind: input, shape index: {}]   ;;  %s3841_s3 = inlined_call_operand.vmem [shape: f32[32,64], index: 3, kind: input, shape index: {}]   ;;  %s3842_s4 = inlined_call_operand.hbm [shape: f32[128,512], index: 4, kind: input, shape index: {}]   ;;  %s3843_s5 = inlined_call_operand.vmem [shape: f32[1,2880], index: 5, kind: input, shape index: {}]   ;;  %s3844_s6 = inlined_call_operand.vmem [shape: f32[8,12], index: 6, kind: output, shape index: {}]  }
   0x1   :  { %12 = vsyncpa [#allocation6], 0  ;;  %s2726_s21 = smov [#allocation3]  }
   0x2   :  { %s20_s22 = sshll.u32 %s2726_s21, 4  ;;  %s21_s22 = int_to_ptr.vmem [resolvable:$true] %s20_s22 }
   0x3   :  { %s2690_s23 = scalar_lea.vmem %s21_s22, 23040  ;;  %p2695_p1 = scmp.lt.s32.totalorder %s21_s22, %s21_s22 }
   0x4   :  { %p2691_p0 = scmp.ne.s32.totalorder %s21_s22, %s2690_s23  ;;  %p2696_p2 = scmp.lt.s32.totalorder %s2690_s23, %s2690_s23 }
   0x6   :  { %p2697_p3 = por %p2696_p2, %p2695_p1 }
   0x8   :  { %p2698_p4 = pnand %p2697_p3, %p2691_p0 }
   0xa   :  { %2701 = shalt.err (!%p2698_p4)
}
   0xb   :  { %s2727_s24 = smov 2304   ;;  %s2728_s25 = smov 144  }
   0xc   :  { %26 = dma.hbm_to_vmem [thread:$0]  %s3839_s1, 23040, %s21_s22, [#allocation4], %s2727_s24, %s2727_s24, %s2728_s25  }
   0xd   :  { %s2729_s28 = smov [#allocation5]  }
   0xe   :  { %s36_s29 = sshll.u32 %s2729_s28, 4  ;;  %s37_s29 = int_to_ptr.vmem [resolvable:$true] %s36_s29 }
   0xf   :  { %s2710_s30 = scalar_lea.vmem %s37_s29, 8192  ;;  %p2715_p6 = scmp.lt.s32.totalorder %s37_s29, %s37_s29 }
  0x10   :  { %p2711_p5 = scmp.ne.s32.totalorder %s37_s29, %s2710_s30  ;;  %p2716_p7 = scmp.lt.s32.totalorder %s2710_s30, %s2710_s30 }
  0x12   :  { %p2717_p8 = por %p2716_p7, %p2715_p6 }
  0x14   :  { %p2718_p9 = pnand %p2717_p8, %p2711_p5 }
  0x16   :  { %2721 = shalt.err (!%p2718_p9)
}
  0x17   :  { %s2730_s7 = smov 512   ;;  %s2731_s8 = smov 32  }
  0x18   :  { %42 = dma.hbm_to_vmem [thread:$0]  %s3842_s4, 8192, %s37_s29, [#allocation6], %s2730_s7, %s2730_s7, %s2731_s8  }
  0x19   :  { %2722 = dma.done.wait [#allocation4], 23040  }
  0x1a   :  { %2723 = vsyncadd [#allocation4], 4294944256 }
  0x1b   :  { %2724 = dma.done.wait [#allocation6], 8192  }
  0x1c   :  { %2725 = vsyncadd [#allocation6], 4294959104  ;;  %v3846_v0 = vmov 0.0   ;;  %vm2733_vm0 = vmmov 0   ;;  %v51_v1 = vld [vmem:[%s3838_s0] sm:$0xff]  ;;  %v56_v2 = vld [vmem:[%s3841_s3 + $0x18] sm:$0xff] }
  0x1d   :  { %2523 = vmatprep.subr.mxu1 %v3846_v0  ;;  %2531 = vmatprep.mubr.msk.f32.mxu1 %vm2733_vm0, %v3846_v0  ;;  %v55_v3 = vld [vmem:[%s3841_s3 + $0x10] sm:$0xff]  ;;  %vm425_vm1 = vcmask 1041408   ;;  %s2734_s15 = smov 94   ;;  %v54_v4 = vld [vmem:[%s3841_s3 + $0x8] sm:$0xff]  ;;  %v311_v6 = vld [vmem:[#allocation3 + $0x520] sm:$0x3] }
  0x1e   :  { %615 = vmatprep.mubr.f32.mxu0 %v3846_v0  ;;  %420 = vrot.lane.b32.xlu0 %v51_v1, %s2734_s15  ;;  %v312_v5 = vld [vmem:[#allocation3 + $0x528] sm:$0x3]  ;;  %v294_v7 = vld [vmem:[#allocation3 + $0x498] sm:$0xff]  ;;  %v53_v8 = vld [vmem:[%s3841_s3] sm:$0xff]  ;;  %vm63_vm2 = vcmask 261120   ;;  %vm422_vm3 = vcmask 605184  }
  0x1f   :  { %2524 = vmatpush3.msra.mxu1 %v56_v2  ;;  %2479 = vmatprep.subr.msk.mxu0 %vm425_vm1, %v312_v5  ;;  %v293_v9 = vld [vmem:[#allocation3 + $0x490] sm:$0xff]  ;;  %v310_v10 = vld [vmem:[#allocation3 + $0x518] sm:$0x3]  ;;  %v276_v12 = vld [vmem:[#allocation3 + $0x408] sm:$0xff]  ;;  %vm140_vm4 = vcmask 523264   ;;  %vm142_vm5 = vcmask 539648  }
  0x20   :  { %2525 = vmatprep.subr.mxu1 %v3846_v0  ;;  %2480 = vmatpush1.msk.msra.mxu0 %vm425_vm1, %v311_v6  ;;  %v309_v11 = vld [vmem:[#allocation3 + $0x510] sm:$0x3]  ;;  %v292_v13 = vld [vmem:[#allocation3 + $0x488] sm:$0xff]  ;;  %v275_v14 = vld [vmem:[#allocation3 + $0x400] sm:$0xff]  ;;  %s2738_s30 = smov 4   ;;  %s2739_s7 = smov 6  }
  0x21   :  { %2526 = vmatpush3.msra.mxu1 %v55_v3  ;;  %565 = vmatprep.subr.mxu0 %v294_v7  ;;  %v291_v15 = vld [vmem:[#allocation3 + $0x480] sm:$0xff]  ;;  %v258_v16 = vld [vmem:[#allocation3 + $0x378] sm:$0xff]  ;;  %v257_v18 = vld [vmem:[#allocation3 + $0x370] sm:$0xff]  ;;  %vm2450_vm6 = vcmask 15360   ;;  %vm2452_vm7 = vcmask 31744   ;;  %vm2454_vm8 = vcmask 48128  }
  0x22   :  { %2527 = vmatprep.subr.mxu1 %v3846_v0  ;;  %137 = vrot.lane.b32.xlu0 %v51_v1, %s2731_s8  ;;  %v274_v17 = vld [vmem:[#allocation3 + $0x3f8] sm:$0xff]  ;;  %v273_v19 = vld [vmem:[#allocation3 + $0x3f0] sm:$0xff]  ;;  %v240_v20 = vld [vmem:[#allocation3 + $0x2e8] sm:$0xff]  ;;  %s2740_s8 = smov 8   ;;  %vm2456_vm10 = vcmask 64512   ;;  %vm2458_vm11 = vcmask 80896  }
  0x23   :  { %2528 = vmatpush3.msra.mxu1 %v54_v4  ;;  %566 = vmatpush1.msra.mxu0 %v293_v9  ;;  %v256_v21 = vld [vmem:[#allocation3 + $0x368] sm:$0xff]  ;;  %v239_v22 = vld [vmem:[#allocation3 + $0x2e0] sm:$0xff]  ;;  %v222_v24 = vld [vmem:[#allocation3 + $0x258] sm:$0xff]  ;;  %vm2466_vm12 = vcmask 97280  }
  0x24   :  { %2529 = vmatprep.subr.mxu1 %v3846_v0  ;;  %567 = vmatprep.subr.mxu0 %v276_v12  ;;  %v255_v23 = vld [vmem:[#allocation3 + $0x360] sm:$0xff]  ;;  %v238_v25 = vld [vmem:[#allocation3 + $0x2d8] sm:$0xff]  ;;  %v221_v26 = vld [vmem:[#allocation3 + $0x250] sm:$0xff] }
  0x25   :  { %2530 = vmatpush3.msra.mxu1 %v53_v8  ;;  %568 = vmatpush1.msra.mxu0 %v275_v14  ;;  %v237_v27 = vld [vmem:[#allocation3 + $0x2d0] sm:$0xff]  ;;  %v204_v28 = vld [vmem:[#allocation3 + $0x1c8] sm:$0xff]  ;;  %v203_v30 = vld [vmem:[#allocation3 + $0x1c0] sm:$0xff] }
  0x26   :  { %2532 = vmatmul.mubr.msk.f32.vlgmr.msra.gmra.mxu1 %vm63_vm2, %v51_v1  ;;  %2476 = vmatprep.subr.msk.mxu1 %vm425_vm1, %v310_v10  ;;  %v220_v29 = vld [vmem:[#allocation3 + $0x248] sm:$0xff]  ;;  %v219_v31 = vld [vmem:[#allocation3 + $0x240] sm:$0xff]  ;;  %v186_v32 = vld [vmem:[#allocation3 + $0x138] sm:$0xff] }
  0x27   :  { %2477 = vmatpush1.msk.msra.mxu1 %vm425_vm1, %v309_v11  ;;  %569 = vmatprep.subr.mxu0 %v258_v16  ;;  %v202_v33 = vld [vmem:[#allocation3 + $0x1b8] sm:$0xff]  ;;  %v185_v34 = vld [vmem:[#allocation3 + $0x130] sm:$0xff]  ;;  %v168_v36 = vld [vmem:[#allocation3 + $0xa8] sm:$0xff] }
  0x28   :  { %494 = vmatprep.subr.mxu1 %v292_v13  ;;  %570 = vmatpush1.msra.mxu0 %v257_v18  ;;  %v201_v35 = vld [vmem:[#allocation3 + $0x1b0] sm:$0xff]  ;;  %v184_v37 = vld [vmem:[#allocation3 + $0x128] sm:$0xff]  ;;  %v167_v38 = vld [vmem:[#allocation3 + $0xa0] sm:$0xff] }
  0x29   :  { %495 = vmatpush1.msra.mxu1 %v291_v15  ;;  %571 = vmatprep.subr.mxu0 %v240_v20  ;;  %v183_v39 = vld [vmem:[#allocation3 + $0x120] sm:$0xff]  ;;  %v150_v40 = vld [vmem:[#allocation3 + $0x18] sm:$0xff]  ;;  %v149_v42 = vld [vmem:[#allocation3 + $0x10] sm:$0xff] }
  0x2a   :  { %496 = vmatprep.subr.mxu1 %v274_v17  ;;  %572 = vmatpush1.msra.mxu0 %v239_v22  ;;  %v166_v41 = vld [vmem:[#allocation3 + $0x98] sm:$0xff]  ;;  %v165_v43 = vld [vmem:[#allocation3 + $0x90] sm:$0xff]  ;;  %v316_v44 = vld [vmem:[#allocation3 + $0x548] sm:$0x3] }
  0x2b   :  { %497 = vmatpush1.msra.mxu1 %v273_v19  ;;  %573 = vmatprep.subr.mxu0 %v222_v24  ;;  %v148_v45 = vld [vmem:[#allocation3 + $0x8] sm:$0xff]  ;;  %v147_v46 = vld [vmem:[#allocation3] sm:$0xff]  ;;  %v314_v47 = vld [vmem:[#allocation3 + $0x538] sm:$0x3] }
  0x2c   :  { %498 = vmatprep.subr.mxu1 %v256_v21  ;;  %574 = vmatpush1.msra.mxu0 %v221_v26  ;;  %v313_v48 = vld [vmem:[#allocation3 + $0x530] sm:$0x3]  ;;  %v315_v49 = vld [vmem:[#allocation3 + $0x540] sm:$0x3]  ;;  %v296_v51 = vld [vmem:[#allocation3 + $0x4a8] sm:$0xff] }
  0x2d   :  { %499 = vmatpush1.msra.mxu1 %v255_v23  ;;  %575 = vmatprep.subr.mxu0 %v204_v28  ;;  %v298_v52 = vld [vmem:[#allocation3 + $0x4b8] sm:$0xff]  ;;  %v295_v53 = vld [vmem:[#allocation3 + $0x4a0] sm:$0xff]  ;;  %v297_v54 = vld [vmem:[#allocation3 + $0x4b0] sm:$0xff] }
  0x2e   :  { %500 = vmatprep.subr.mxu1 %v238_v25  ;;  %576 = vmatpush1.msra.mxu0 %v203_v30  ;;  %v278_v55 = vld [vmem:[#allocation3 + $0x418] sm:$0xff]  ;;  %v280_v56 = vld [vmem:[#allocation3 + $0x428] sm:$0xff]  ;;  %v277_v57 = vld [vmem:[#allocation3 + $0x410] sm:$0xff] }
  0x2f   :  { %501 = vmatpush1.msra.mxu1 %v237_v27  ;;  %577 = vmatprep.subr.mxu0 %v186_v32  ;;  %v279_v58 = vld [vmem:[#allocation3 + $0x420] sm:$0xff]  ;;  %v260_v59 = vld [vmem:[#allocation3 + $0x388] sm:$0xff]  ;;  %v262_v60 = vld [vmem:[#allocation3 + $0x398] sm:$0xff] }
  0x30   :  { %502 = vmatprep.subr.mxu1 %v220_v29  ;;  %578 = vmatpush1.msra.mxu0 %v185_v34  ;;  %v259_v61 = vld [vmem:[#allocation3 + $0x380] sm:$0xff]  ;;  %v261_v62 = vld [vmem:[#allocation3 + $0x390] sm:$0xff]  ;;  %v242_v63 = vld [vmem:[#allocation3 + $0x2f8] sm:$0xff] }
  0x31   :  { %503 = vmatpush1.msra.mxu1 %v219_v31  ;;  %579 = vmatprep.subr.mxu0 %v168_v36  ;;  %v244_v1 = vld [vmem:[#allocation3 + $0x308] sm:$0xff]  ;;  %v241_v2 = vld [vmem:[#allocation3 + $0x2f0] sm:$0xff]  ;;  %v243_v3 = vld [vmem:[#allocation3 + $0x300] sm:$0xff] }
  0x32   :  { %504 = vmatprep.subr.mxu1 %v202_v33  ;;  %580 = vmatpush1.msra.mxu0 %v167_v38  ;;  %v224_v4 = vld [vmem:[#allocation3 + $0x268] sm:$0xff]  ;;  %v226_v5 = vld [vmem:[#allocation3 + $0x278] sm:$0xff]  ;;  %v223_v6 = vld [vmem:[#allocation3 + $0x260] sm:$0xff] }
  0x33   :  { %505 = vmatpush1.msra.mxu1 %v201_v35  ;;  %581 = vmatprep.subr.mxu0 %v150_v40  ;;  %v225_v7 = vld [vmem:[#allocation3 + $0x270] sm:$0xff]  ;;  %v206_v8 = vld [vmem:[#allocation3 + $0x1d8] sm:$0xff]  ;;  %v208_v9 = vld [vmem:[#allocation3 + $0x1e8] sm:$0xff] }
  0x34   :  { %506 = vmatprep.subr.mxu1 %v184_v37  ;;  %582 = vmatpush1.msra.mxu0 %v149_v42  ;;  %v205_v10 = vld [vmem:[#allocation3 + $0x1d0] sm:$0xff]  ;;  %v207_v11 = vld [vmem:[#allocation3 + $0x1e0] sm:$0xff]  ;;  %v188_v12 = vld [vmem:[#allocation3 + $0x148] sm:$0xff] }
  0x35   :  { %507 = vmatpush1.msra.mxu1 %v183_v39  ;;  %2485 = vmatprep.subr.msk.mxu0 %vm425_vm1, %v316_v44  ;;  %v190_v13 = vld [vmem:[#allocation3 + $0x158] sm:$0xff]  ;;  %v187_v14 = vld [vmem:[#allocation3 + $0x140] sm:$0xff]  ;;  %v189_v15 = vld [vmem:[#allocation3 + $0x150] sm:$0xff] }
  0x36   :  { %508 = vmatprep.subr.mxu1 %v166_v41  ;;  %544 = vmatprep.mubr.f32.mxu1 %v3846_v0  ;;  %v170_v16 = vld [vmem:[#allocation3 + $0xb8] sm:$0xff]  ;;  %v172_v17 = vld [vmem:[#allocation3 + $0xc8] sm:$0xff]  ;;  %v169_v18 = vld [vmem:[#allocation3 + $0xb0] sm:$0xff] }
  0x37   :  { %509 = vmatpush1.msra.mxu1 %v165_v43  ;;  %v171_v19 = vld [vmem:[#allocation3 + $0xc0] sm:$0xff]  ;;  %v152_v20 = vld [vmem:[#allocation3 + $0x28] sm:$0xff]  ;;  %v154_v21 = vld [vmem:[#allocation3 + $0x38] sm:$0xff] }
  0x38   :  { %510 = vmatprep.subr.mxu1 %v148_v45  ;;  %v151_v22 = vld [vmem:[#allocation3 + $0x20] sm:$0xff]  ;;  %v153_v23 = vld [vmem:[#allocation3 + $0x30] sm:$0xff]  ;;  %v318_v24 = vld [vmem:[#allocation3 + $0x558] sm:$0x3] }
  0x39   :  { %511 = vmatpush1.msra.mxu1 %v147_v46  ;;  %v320_v25 = vld [vmem:[#allocation3 + $0x568] sm:$0x3]  ;;  %v317_v26 = vld [vmem:[#allocation3 + $0x550] sm:$0x3]  ;;  %v319_v27 = vld [vmem:[#allocation3 + $0x560] sm:$0x3] }
  0x3a   :  { %2482 = vmatprep.subr.msk.mxu1 %vm425_vm1, %v314_v47  ;;  %v300_v28 = vld [vmem:[#allocation3 + $0x4c8] sm:$0xff]  ;;  %v302_v29 = vld [vmem:[#allocation3 + $0x4d8] sm:$0xff]  ;;  %v299_v30 = vld [vmem:[#allocation3 + $0x4c0] sm:$0xff] }
  0x3b   :  { %v301_v31 = vld [vmem:[#allocation3 + $0x4d0] sm:$0xff]  ;;  %v282_v32 = vld [vmem:[#allocation3 + $0x438] sm:$0xff]  ;;  %v284_v33 = vld [vmem:[#allocation3 + $0x448] sm:$0xff] }
  0x3c   :  { %v281_v34 = vld [vmem:[#allocation3 + $0x430] sm:$0xff]  ;;  %v283_v35 = vld [vmem:[#allocation3 + $0x440] sm:$0xff]  ;;  %v264_v36 = vld [vmem:[#allocation3 + $0x3a8] sm:$0xff] }
  0x3d   :  { %v266_v37 = vld [vmem:[#allocation3 + $0x3b8] sm:$0xff]  ;;  %v263_v38 = vld [vmem:[#allocation3 + $0x3a0] sm:$0xff]  ;;  %v265_v39 = vld [vmem:[#allocation3 + $0x3b0] sm:$0xff] }
  0x3e   :  { %v246_v40 = vld [vmem:[#allocation3 + $0x318] sm:$0xff]  ;;  %v248_v41 = vld [vmem:[#allocation3 + $0x328] sm:$0xff]  ;;  %v245_v42 = vld [vmem:[#allocation3 + $0x310] sm:$0xff] }
  0x3f   :  { %v247_v43 = vld [vmem:[#allocation3 + $0x320] sm:$0xff]  ;;  %v228_v44 = vld [vmem:[#allocation3 + $0x288] sm:$0xff]  ;;  %v230_v45 = vld [vmem:[#allocation3 + $0x298] sm:$0xff] }
  0x40   :  { %v227_v46 = vld [vmem:[#allocation3 + $0x280] sm:$0xff]  ;;  %v229_v47 = vld [vmem:[#allocation3 + $0x290] sm:$0xff] }
  0x90   :  { %v2813_v50 = vpop.permute.xlu0 %420 }
  0x91   :  { %2478 = vmatmul.mubr.msk.f32.vlgmr.msra.gmra.mxu1 %vm422_vm3, %v2813_v50  ;;  %2481 = vmatmul.mubr.msk.f32.vlgmr.msra.gmra.mxu0 %vm422_vm3, %v2813_v50 }
  0x92   :  { %2483 = vmatpush1.msk.msra.mxu1 %vm425_vm1, %v313_v48  ;;  %2486 = vmatpush1.msk.msra.mxu0 %vm425_vm1, %v315_v49  ;;  %v210_v48 = vld [vmem:[#allocation3 + $0x1f8] sm:$0xff]  ;;  %v212_v49 = vld [vmem:[#allocation3 + $0x208] sm:$0xff] }
  0x93   :  { %636 = vmatprep.subr.mxu1 %v296_v51  ;;  %707 = vmatprep.subr.mxu0 %v298_v52  ;;  %v209_v51 = vld [vmem:[#allocation3 + $0x1f0] sm:$0xff]  ;;  %v211_v52 = vld [vmem:[#allocation3 + $0x200] sm:$0xff] }
  0x94   :  { %637 = vmatpush1.msra.mxu1 %v295_v53  ;;  %708 = vmatpush1.msra.mxu0 %v297_v54  ;;  %v192_v53 = vld [vmem:[#allocation3 + $0x168] sm:$0xff]  ;;  %v194_v54 = vld [vmem:[#allocation3 + $0x178] sm:$0xff] }
  0x95   :  { %638 = vmatprep.subr.mxu1 %v278_v55  ;;  %709 = vmatprep.subr.mxu0 %v280_v56  ;;  %v191_v55 = vld [vmem:[#allocation3 + $0x160] sm:$0xff]  ;;  %v193_v56 = vld [vmem:[#allocation3 + $0x170] sm:$0xff] }
  0x96   :  { %639 = vmatpush1.msra.mxu1 %v277_v57  ;;  %710 = vmatpush1.msra.mxu0 %v279_v58  ;;  %v174_v57 = vld [vmem:[#allocation3 + $0xd8] sm:$0xff]  ;;  %v176_v58 = vld [vmem:[#allocation3 + $0xe8] sm:$0xff] }
  0x97   :  { %640 = vmatprep.subr.mxu1 %v260_v59  ;;  %711 = vmatprep.subr.mxu0 %v262_v60  ;;  %v173_v59 = vld [vmem:[#allocation3 + $0xd0] sm:$0xff]  ;;  %v175_v60 = vld [vmem:[#allocation3 + $0xe0] sm:$0xff] }
  0x98   :  { %641 = vmatpush1.msra.mxu1 %v259_v61  ;;  %712 = vmatpush1.msra.mxu0 %v261_v62  ;;  %v156_v61 = vld [vmem:[#allocation3 + $0x48] sm:$0xff]  ;;  %v158_v62 = vld [vmem:[#allocation3 + $0x58] sm:$0xff] }
  0x99   :  { %642 = vmatprep.subr.mxu1 %v242_v63  ;;  %713 = vmatprep.subr.mxu0 %v244_v1  ;;  %v155_v63 = vld [vmem:[#allocation3 + $0x40] sm:$0xff]  ;;  %v157_v1 = vld [vmem:[#allocation3 + $0x50] sm:$0xff] }
  0x9a   :  { %643 = vmatpush1.msra.mxu1 %v241_v2  ;;  %714 = vmatpush1.msra.mxu0 %v243_v3  ;;  %v322_v2 = vld [vmem:[#allocation3 + $0x578] sm:$0x3]  ;;  %v324_v3 = vld [vmem:[#allocation3 + $0x588] sm:$0x3] }
  0x9b   :  { %644 = vmatprep.subr.mxu1 %v224_v4  ;;  %715 = vmatprep.subr.mxu0 %v226_v5  ;;  %v321_v4 = vld [vmem:[#allocation3 + $0x570] sm:$0x3]  ;;  %v323_v5 = vld [vmem:[#allocation3 + $0x580] sm:$0x3] }
  0x9c   :  { %645 = vmatpush1.msra.mxu1 %v223_v6  ;;  %716 = vmatpush1.msra.mxu0 %v225_v7  ;;  %v304_v6 = vld [vmem:[#allocation3 + $0x4e8] sm:$0xff]  ;;  %v306_v7 = vld [vmem:[#allocation3 + $0x4f8] sm:$0xff] }
  0x9d   :  { %646 = vmatprep.subr.mxu1 %v206_v8  ;;  %717 = vmatprep.subr.mxu0 %v208_v9  ;;  %v303_v8 = vld [vmem:[#allocation3 + $0x4e0] sm:$0xff]  ;;  %v305_v9 = vld [vmem:[#allocation3 + $0x4f0] sm:$0xff] }
  0x9e   :  { %647 = vmatpush1.msra.mxu1 %v205_v10  ;;  %718 = vmatpush1.msra.mxu0 %v207_v11  ;;  %v286_v10 = vld [vmem:[#allocation3 + $0x458] sm:$0xff]  ;;  %v288_v11 = vld [vmem:[#allocation3 + $0x468] sm:$0xff] }
  0x9f   :  { %648 = vmatprep.subr.mxu1 %v188_v12  ;;  %719 = vmatprep.subr.mxu0 %v190_v13  ;;  %v285_v12 = vld [vmem:[#allocation3 + $0x450] sm:$0xff]  ;;  %v287_v13 = vld [vmem:[#allocation3 + $0x460] sm:$0xff] }
  0xa0   :  { %649 = vmatpush1.msra.mxu1 %v187_v14  ;;  %720 = vmatpush1.msra.mxu0 %v189_v15  ;;  %v268_v14 = vld [vmem:[#allocation3 + $0x3c8] sm:$0xff]  ;;  %v270_v15 = vld [vmem:[#allocation3 + $0x3d8] sm:$0xff] }
  0xa1   :  { %650 = vmatprep.subr.mxu1 %v170_v16  ;;  %721 = vmatprep.subr.mxu0 %v172_v17  ;;  %v267_v16 = vld [vmem:[#allocation3 + $0x3c0] sm:$0xff]  ;;  %v269_v17 = vld [vmem:[#allocation3 + $0x3d0] sm:$0xff] }
  0xa2   :  { %651 = vmatpush1.msra.mxu1 %v169_v18  ;;  %722 = vmatpush1.msra.mxu0 %v171_v19  ;;  %v250_v18 = vld [vmem:[#allocation3 + $0x338] sm:$0xff]  ;;  %v252_v19 = vld [vmem:[#allocation3 + $0x348] sm:$0xff] }
  0xa3   :  { %652 = vmatprep.subr.mxu1 %v152_v20  ;;  %723 = vmatprep.subr.mxu0 %v154_v21  ;;  %v249_v20 = vld [vmem:[#allocation3 + $0x330] sm:$0xff]  ;;  %v251_v21 = vld [vmem:[#allocation3 + $0x340] sm:$0xff] }
  0xa4   :  { %653 = vmatpush1.msra.mxu1 %v151_v22  ;;  %686 = vmatprep.mubr.f32.mxu1 %v3846_v0  ;;  %v232_v22 = vld [vmem:[#allocation3 + $0x2a8] sm:$0xff] }
  0xa5   :  { %724 = vmatpush1.msra.mxu0 %v153_v23  ;;  %757 = vmatprep.mubr.f32.mxu0 %v3846_v0  ;;  %v234_v23 = vld [vmem:[#allocation3 + $0x2b8] sm:$0xff] }
  0xa6   :  { %2484 = vmatmul.mubr.msk.f32.vlgmr.msra.gmra.mxu1 %vm422_vm3, %v2813_v50  ;;  %2487 = vmatmul.mubr.msk.f32.vlgmr.msra.gmra.mxu0 %vm422_vm3, %v2813_v50 }
  0xa7   :  { %2488 = vmatprep.subr.msk.mxu1 %vm425_vm1, %v318_v24  ;;  %2491 = vmatprep.subr.msk.mxu0 %vm425_vm1, %v320_v25  ;;  %v231_v24 = vld [vmem:[#allocation3 + $0x2a0] sm:$0xff]  ;;  %v233_v25 = vld [vmem:[#allocation3 + $0x2b0] sm:$0xff] }
  0xa8   :  { %2489 = vmatpush1.msk.msra.mxu1 %vm425_vm1, %v317_v26  ;;  %2492 = vmatpush1.msk.msra.mxu0 %vm425_vm1, %v319_v27  ;;  %v214_v26 = vld [vmem:[#allocation3 + $0x218] sm:$0xff]  ;;  %v216_v27 = vld [vmem:[#allocation3 + $0x228] sm:$0xff] }
  0xa9   :  { %778 = vmatprep.subr.mxu1 %v300_v28  ;;  %849 = vmatprep.subr.mxu0 %v302_v29  ;;  %v213_v28 = vld [vmem:[#allocation3 + $0x210] sm:$0xff]  ;;  %v215_v29 = vld [vmem:[#allocation3 + $0x220] sm:$0xff] }
  0xaa   :  { %779 = vmatpush1.msra.mxu1 %v299_v30  ;;  %850 = vmatpush1.msra.mxu0 %v301_v31  ;;  %v196_v30 = vld [vmem:[#allocation3 + $0x188] sm:$0xff]  ;;  %v198_v31 = vld [vmem:[#allocation3 + $0x198] sm:$0xff] }
  0xab   :  { %780 = vmatprep.subr.mxu1 %v282_v32  ;;  %851 = vmatprep.subr.mxu0 %v284_v33  ;;  %v195_v32 = vld [vmem:[#allocation3 + $0x180] sm:$0xff]  ;;  %v197_v33 = vld [vmem:[#allocation3 + $0x190] sm:$0xff] }
  0xac   :  { %781 = vmatpush1.msra.mxu1 %v281_v34  ;;  %852 = vmatpush1.msra.mxu0 %v283_v35  ;;  %v178_v34 = vld [vmem:[#allocation3 + $0xf8] sm:$0xff]  ;;  %v180_v35 = vld [vmem:[#allocation3 + $0x108] sm:$0xff] }
  0xad   :  { %782 = vmatprep.subr.mxu1 %v264_v36  ;;  %853 = vmatprep.subr.mxu0 %v266_v37  ;;  %v177_v36 = vld [vmem:[#allocation3 + $0xf0] sm:$0xff]  ;;  %v179_v37 = vld [vmem:[#allocation3 + $0x100] sm:$0xff] }
  0xae   :  { %783 = vmatpush1.msra.mxu1 %v263_v38  ;;  %854 = vmatpush1.msra.mxu0 %v265_v39  ;;  %v160_v38 = vld [vmem:[#allocation3 + $0x68] sm:$0xff]  ;;  %v162_v39 = vld [vmem:[#allocation3 + $0x78] sm:$0xff] }
  0xaf   :  { %784 = vmatprep.subr.mxu1 %v246_v40  ;;  %855 = vmatprep.subr.mxu0 %v248_v41  ;;  %v159_v40 = vld [vmem:[#allocation3 + $0x60] sm:$0xff]  ;;  %v161_v41 = vld [vmem:[#allocation3 + $0x70] sm:$0xff] }
  0xb0   :  { %785 = vmatpush1.msra.mxu1 %v245_v42  ;;  %856 = vmatpush1.msra.mxu0 %v247_v43  ;;  %v326_v42 = vld [vmem:[#allocation3 + $0x598] sm:$0x3]  ;;  %v2842_v43 = vld [vmem:[#allocation5 + $0x1e8] sm:$0xff] }
  0xb1   :  { %786 = vmatprep.subr.mxu1 %v228_v44  ;;  %857 = vmatprep.subr.mxu0 %v230_v45  ;;  %3949 = vst [vmem:[#allocation9_spill] sm:$0xff] %v2842_v43  ;;  %v325_v44 = vld [vmem:[#allocation3 + $0x590] sm:$0x3]  ;;  %v2845_v45 = vld [vmem:[#allocation5 + $0x1e0] sm:$0xff] }
  0xb2   :  { %787 = vmatpush1.msra.mxu1 %v227_v46  ;;  %858 = vmatpush1.msra.mxu0 %v229_v47  ;;  %v308_v46 = vld [vmem:[#allocation3 + $0x508] sm:$0xff] }
  0xb3   :  { %788 = vmatprep.subr.mxu1 %v210_v48  ;;  %859 = vmatprep.subr.mxu0 %v212_v49  ;;  %v2851_v47 = vld [vmem:[#allocation5 + $0x1c8] sm:$0xff]  ;;  %v307_v48 = vld [vmem:[#allocation3 + $0x500] sm:$0xff] }
  0xb4   :  { %789 = vmatpush1.msra.mxu1 %v209_v51  ;;  %860 = vmatpush1.msra.mxu0 %v211_v52  ;;  %v2855_v49 = vld [vmem:[#allocation5 + $0x1c0] sm:$0xff]  ;;  %v290_v51 = vld [vmem:[#allocation3 + $0x478] sm:$0xff]  ;;  %v2859_v52 = vld [vmem:[#allocation5 + $0x1a8] sm:$0xff] }
  0xb5   :  { %790 = vmatprep.subr.mxu1 %v192_v53  ;;  %861 = vmatprep.subr.mxu0 %v194_v54  ;;  %v289_v53 = vld [vmem:[#allocation3 + $0x470] sm:$0xff]  ;;  %v2862_v54 = vld [vmem:[#allocation5 + $0x1a0] sm:$0xff] }
  0xb6   :  { %791 = vmatpush1.msra.mxu1 %v191_v55  ;;  %862 = vmatpush1.msra.mxu0 %v193_v56  ;;  %3950 = vst [vmem:[#allocation10_spill] sm:$0xff] %v2862_v54  ;;  %v272_v55 = vld [vmem:[#allocation3 + $0x3e8] sm:$0xff] }
  0xb7   :  { %792 = vmatprep.subr.mxu1 %v174_v57  ;;  %863 = vmatprep.subr.mxu0 %v176_v58  ;;  %v2865_v56 = vld [vmem:[#allocation5 + $0x188] sm:$0xff]  ;;  %v271_v57 = vld [vmem:[#allocation3 + $0x3e0] sm:$0xff] }
  0xb8   :  { %793 = vmatpush1.msra.mxu1 %v173_v59  ;;  %864 = vmatpush1.msra.mxu0 %v175_v60  ;;  %3951 = vst [vmem:[#allocation11_spill] sm:$0xff] %v2865_v56  ;;  %v2868_v58 = vld [vmem:[#allocation5 + $0x180] sm:$0xff]  ;;  %v254_v59 = vld [vmem:[#allocation3 + $0x358] sm:$0xff]  ;;  %v2871_v60 = vld [vmem:[#allocation5 + $0x168] sm:$0xff] }
  0xb9   :  { %794 = vmatprep.subr.mxu1 %v156_v61  ;;  %865 = vmatprep.subr.mxu0 %v158_v62  ;;  %3952 = vst [vmem:[#allocation12_spill] sm:$0xff] %v2868_v58  ;;  %3953 = vst [vmem:[#allocation13_spill] sm:$0xff] %v2871_v60  ;;  %v253_v61 = vld [vmem:[#allocation3 + $0x350] sm:$0xff]  ;;  %v2874_v62 = vld [vmem:[#allocation5 + $0x160] sm:$0xff] }
  0xba   :  { %795 = vmatpush1.msra.mxu1 %v155_v63  ;;  %828 = vmatprep.mubr.f32.mxu1 %v3846_v0  ;;  %v236_v63 = vld [vmem:[#allocation3 + $0x2c8] sm:$0xff] }
  0xbb   :  { %866 = vmatpush1.msra.mxu0 %v157_v1  ;;  %899 = vmatprep.mubr.f32.mxu0 %v3846_v0  ;;  %v2877_v1 = vld [vmem:[#allocation5 + $0x148] sm:$0xff] }
  0xbc   :  { %2490 = vmatmul.mubr.msk.f32.vlgmr.msra.gmra.mxu1 %vm422_vm3, %v2813_v50  ;;  %2493 = vmatmul.mubr.msk.f32.vlgmr.msra.gmra.mxu0 %vm422_vm3, %v2813_v50  ;;  %3954 = vst [vmem:[#allocation14_spill] sm:$0xff] %v2877_v1 }
  0xbd   :  { %2494 = vmatprep.subr.msk.mxu1 %vm425_vm1, %v322_v2  ;;  %2497 = vmatprep.subr.msk.mxu0 %vm425_vm1, %v324_v3  ;;  %v235_v2 = vld [vmem:[#allocation3 + $0x2c0] sm:$0xff] }
  0xbe   :  { %2495 = vmatpush1.msk.msra.mxu1 %vm425_vm1, %v321_v4  ;;  %2498 = vmatpush1.msk.msra.mxu0 %vm425_vm1, %v323_v5  ;;  %v2880_v3 = vld [vmem:[#allocation5 + $0x140] sm:$0xff]  ;;  %v218_v4 = vld [vmem:[#allocation3 + $0x238] sm:$0xff]  ;;  %v2883_v5 = vld [vmem:[#allocation5 + $0x128] sm:$0xff] }
  0xbf   :  { %920 = vmatprep.subr.mxu1 %v304_v6  ;;  %991 = vmatprep.subr.mxu0 %v306_v7  ;;  %3955 = vst [vmem:[#allocation15_spill] sm:$0xff] %v2880_v3  ;;  %v217_v6 = vld [vmem:[#allocation3 + $0x230] sm:$0xff]  ;;  %v2886_v7 = vld [vmem:[#allocation5 + $0x120] sm:$0xff] }
  0xc0   :  { %921 = vmatpush1.msra.mxu1 %v303_v8  ;;  %992 = vmatpush1.msra.mxu0 %v305_v9  ;;  %v200_v8 = vld [vmem:[#allocation3 + $0x1a8] sm:$0xff] }
  0xc1   :  { %922 = vmatprep.subr.mxu1 %v286_v10  ;;  %993 = vmatprep.subr.mxu0 %v288_v11  ;;  %v2889_v9 = vld [vmem:[#allocation5 + $0x108] sm:$0xff]  ;;  %v199_v10 = vld [vmem:[#allocation3 + $0x1a0] sm:$0xff] }
  0xc2   :  { %923 = vmatpush1.msra.mxu1 %v285_v12  ;;  %994 = vmatpush1.msra.mxu0 %v287_v13  ;;  %v2892_v11 = vld [vmem:[#allocation5 + $0x100] sm:$0xff]  ;;  %v182_v12 = vld [vmem:[#allocation3 + $0x118] sm:$0xff]  ;;  %v2895_v13 = vld [vmem:[#allocation5 + $0xe8] sm:$0xff] }
  0xc3   :  { %924 = vmatprep.subr.mxu1 %v268_v14  ;;  %995 = vmatprep.subr.mxu0 %v270_v15  ;;  %3956 = vst [vmem:[#allocation16_spill] sm:$0xff] %v2895_v13  ;;  %v181_v14 = vld [vmem:[#allocation3 + $0x110] sm:$0xff]  ;;  %v2898_v15 = vld [vmem:[#allocation5 + $0xe0] sm:$0xff] }
  0xc4   :  { %925 = vmatpush1.msra.mxu1 %v267_v16  ;;  %996 = vmatpush1.msra.mxu0 %v269_v17  ;;  %3957 = vst [vmem:[#allocation17_spill] sm:$0xff] %v2898_v15  ;;  %v164_v16 = vld [vmem:[#allocation3 + $0x88] sm:$0xff] }
  0xc5   :  { %926 = vmatprep.subr.mxu1 %v250_v18  ;;  %997 = vmatprep.subr.mxu0 %v252_v19  ;;  %v2901_v17 = vld [vmem:[#allocation5 + $0xc8] sm:$0xff]  ;;  %v163_v18 = vld [vmem:[#allocation3 + $0x80] sm:$0xff]  ;;  %v2474_v19 = vld [vmem:[%s3843_s5 + $0x16] ss:$0 sm:$0xff] }
  0xc6   :  { %927 = vmatpush1.msra.mxu1 %v249_v20  ;;  %998 = vmatpush1.msra.mxu0 %v251_v21  ;;  %3958 = vst [vmem:[#allocation18_spill] sm:$0xff] %v2901_v17  ;;  %v2908_v20 = vld [vmem:[#allocation5 + $0xc0] sm:$0xff]  ;;  %v2911_v21 = vld [vmem:[#allocation5 + $0xa8] sm:$0xff] }
  0xc7   :  { %928 = vmatprep.subr.mxu1 %v232_v22  ;;  %999 = vmatprep.subr.mxu0 %v234_v23  ;;  %3959 = vst [vmem:[#allocation19_spill] sm:$0xff] %v2908_v20  ;;  %3960 = vst [vmem:[#allocation20_spill] sm:$0xff] %v2911_v21  ;;  %v2913_v22 = vld [vmem:[#allocation5 + $0x1f8] sm:$0xff] }
  0xc8   :  { %929 = vmatpush1.msra.mxu1 %v231_v24  ;;  %1000 = vmatpush1.msra.mxu0 %v233_v25  ;;  %3961 = vst [vmem:[#allocation21_spill] sm:$0xff] %v2913_v22  ;;  %v138_v24 = vpop.permute.xlu0 %137  ;;  %v2916_v25 = vld [vmem:[#allocation5 + $0xa0] sm:$0xff] }
  0xc9   :  { %930 = vmatprep.subr.mxu1 %v214_v26  ;;  %1001 = vmatprep.subr.mxu0 %v216_v27  ;;  %3962 = vst [vmem:[#allocation22_spill] sm:$0xff] %v2916_v25  ;;  %v2918_v26 = vld [vmem:[#allocation5 + $0x1f0] sm:$0xff] }
  0xca   :  { %931 = vmatpush1.msra.mxu1 %v213_v28  ;;  %1002 = vmatpush1.msra.mxu0 %v215_v29  ;;  %v2923_v28 = vld [vmem:[#allocation5 + $0x88] sm:$0xff]  ;;  %v2925_v29 = vld [vmem:[#allocation5 + $0x1d8] sm:$0xff] }
  0xcb   :  { %932 = vmatprep.subr.mxu1 %v196_v30  ;;  %1003 = vmatprep.subr.mxu0 %v198_v31  ;;  %3963 = vst [vmem:[#allocation23_spill] sm:$0xff] %v2923_v28  ;;  %v2929_v31 = vld [vmem:[#allocation5 + $0x80] sm:$0xff] }
  0xcc   :  { %933 = vmatpush1.msra.mxu1 %v195_v32  ;;  %1004 = vmatpush1.msra.mxu0 %v197_v33  ;;  %3964 = vst [vmem:[#allocation24_spill] sm:$0xff] %v2929_v31  ;;  %v2931_v32 = vld [vmem:[#allocation5 + $0x1d0] sm:$0xff] }
  0xcd   :  { %934 = vmatprep.subr.mxu1 %v178_v34  ;;  %1005 = vmatprep.subr.mxu0 %v180_v35  ;;  %v2940_v34 = vld [vmem:[#allocation5 + $0x1b8] sm:$0xff] }
  0xce   :  { %935 = vmatpush1.msra.mxu1 %v177_v36  ;;  %1006 = vmatpush1.msra.mxu0 %v179_v37  ;;  %v2948_v36 = vld [vmem:[#allocation5 + $0x60] sm:$0xff]  ;;  %v2950_v37 = vld [vmem:[#allocation5 + $0x1b0] sm:$0xff] }
  0xcf   :  { %936 = vmatprep.subr.mxu1 %v160_v38  ;;  %1007 = vmatprep.subr.mxu0 %v162_v39  ;;  %3966 = vst [vmem:[#allocation26_spill] sm:$0xff] %v2948_v36  ;;  %v2954_v38 = vld [vmem:[#allocation5 + $0x48] sm:$0xff]  ;;  %v2956_v39 = vld [vmem:[#allocation5 + $0x198] sm:$0xff] }
  0xd0   :  { %937 = vmatpush1.msra.mxu1 %v159_v40  ;;  %970 = vmatprep.mubr.f32.mxu1 %v3846_v0  ;;  %3967 = vst [vmem:[#allocation27_spill] sm:$0xff] %v2954_v38  ;;  %v2960_v40 = vld [vmem:[#allocation5 + $0x40] sm:$0xff] }
  0xd1   :  { %1008 = vmatpush1.msra.mxu0 %v161_v41  ;;  %1041 = vmatprep.mubr.f32.mxu0 %v3846_v0  ;;  %3968 = vst [vmem:[#allocation28_spill] sm:$0xff] %v2960_v40  ;;  %v2962_v41 = vld [vmem:[#allocation5 + $0x190] sm:$0xff] }
  0xd2   :  { %2496 = vmatmul.mubr.msk.f32.vlgmr.msra.gmra.mxu1 %vm422_vm3, %v2813_v50  ;;  %2499 = vmatmul.mubr.msk.f32.vlgmr.msra.gmra.mxu0 %vm422_vm3, %v2813_v50 }
  0xd3   :  { %2500 = vmatprep.subr.msk.mxu1 %vm425_vm1, %v326_v42  ;;  %1226 = vmatprep.subr.mxu0 %v2842_v43  ;;  %v2966_v42 = vld [vmem:[#allocation5 + $0x28] sm:$0xff] }
  0xd4   :  { %2501 = vmatpush1.msk.msra.mxu1 %vm425_vm1, %v325_v44  ;;  %1227 = vmatpush1.msra.mxu0 %v2845_v45  ;;  %3969 = vst [vmem:[#allocation29_spill] sm:$0xff] %v2966_v42  ;;  %v2968_v44 = vld [vmem:[#allocation5 + $0x178] sm:$0xff] }
  0xd5   :  { %1062 = vmatprep.subr.mxu1 %v308_v46  ;;  %1228 = vmatprep.subr.mxu0 %v2851_v47  ;;  %v2972_v46 = vld [vmem:[#allocation5 + $0x20] sm:$0xff] }
  0xd6   :  { %1063 = vmatpush1.msra.mxu1 %v307_v48  ;;  %1229 = vmatpush1.msra.mxu0 %v2855_v49  ;;  %3970 = vst [vmem:[#allocation30_spill] sm:$0xff] %v2972_v46  ;;  %v2974_v48 = vld [vmem:[#allocation5 + $0x170] sm:$0xff] }
  0xd7   :  { %1064 = vmatprep.subr.mxu1 %v290_v51  ;;  %1230 = vmatprep.subr.mxu0 %v2859_v52  ;;  %v2978_v51 = vld [vmem:[#allocation5 + $0x8] sm:$0xff] }
  0xd8   :  { %1065 = vmatpush1.msra.mxu1 %v289_v53  ;;  %1231 = vmatpush1.msra.mxu0 %v2862_v54  ;;  %3971 = vst [vmem:[#allocation31_spill] sm:$0xff] %v2978_v51  ;;  %v2980_v53 = vld [vmem:[#allocation5 + $0x158] sm:$0xff] }
  0xd9   :  { %1066 = vmatprep.subr.mxu1 %v272_v55  ;;  %1232 = vmatprep.subr.mxu0 %v2865_v56  ;;  %v2984_v55 = vld [vmem:[#allocation5] sm:$0xff] }
  0xda   :  { %1067 = vmatpush1.msra.mxu1 %v271_v57  ;;  %1233 = vmatpush1.msra.mxu0 %v2868_v58  ;;  %3972 = vst [vmem:[#allocation32_spill] sm:$0xff] %v2984_v55  ;;  %v2988_v57 = vld [vmem:[#allocation5 + $0x150] sm:$0xff] }
  0xdb   :  { %1068 = vmatprep.subr.mxu1 %v254_v59  ;;  %1234 = vmatprep.subr.mxu0 %v2871_v60  ;;  %v2992_v59 = vld [vmem:[#allocation5 + $0x138] sm:$0xff] }
  0xdc   :  { %1069 = vmatpush1.msra.mxu1 %v253_v61  ;;  %1235 = vmatpush1.msra.mxu0 %v2874_v62  ;;  %v2996_v61 = vld [vmem:[#allocation5 + $0x130] sm:$0xff] }
  0xdd   :  { %1070 = vmatprep.subr.mxu1 %v236_v63  ;;  %1236 = vmatprep.subr.mxu0 %v2877_v1  ;;  %v3001_v63 = vld [vmem:[#allocation5 + $0x118] sm:$0xff] }
  0xde   :  { %1071 = vmatpush1.msra.mxu1 %v235_v2  ;;  %1237 = vmatpush1.msra.mxu0 %v2880_v3  ;;  %v3004_v2 = vld [vmem:[#allocation5 + $0x110] sm:$0xff] }
  0xdf   :  { %1072 = vmatprep.subr.mxu1 %v218_v4  ;;  %1238 = vmatprep.subr.mxu0 %v2883_v5  ;;  %v3008_v4 = vld [vmem:[#allocation5 + $0xf8] sm:$0xff] }
  0xe0   :  { %1073 = vmatpush1.msra.mxu1 %v217_v6  ;;  %1239 = vmatpush1.msra.mxu0 %v2886_v7  ;;  %3973 = vst [vmem:[#allocation33_spill] sm:$0xff] %v3008_v4  ;;  %v3012_v6 = vld [vmem:[#allocation5 + $0xf0] sm:$0xff] }
  0xe1   :  { %1074 = vmatprep.subr.mxu1 %v200_v8  ;;  %1240 = vmatprep.subr.mxu0 %v2889_v9  ;;  %3974 = vst [vmem:[#allocation34_spill] sm:$0xff] %v3012_v6  ;;  %v3845_v8 = vlaneseq }
  0xe2   :  { %1075 = vmatpush1.msra.mxu1 %v199_v10  ;;  %1241 = vmatpush1.msra.mxu0 %v2892_v11  ;;  %v3016_v10 = vld [vmem:[#allocation5 + $0xd8] sm:$0xff] }
  0xe3   :  { %1076 = vmatprep.subr.mxu1 %v182_v12  ;;  %1242 = vmatprep.subr.mxu0 %v2895_v13  ;;  %3975 = vst [vmem:[#allocation35_spill] sm:$0xff] %v3016_v10  ;;  %v3020_v12 = vld [vmem:[#allocation5 + $0xd0] sm:$0xff] }
  0xe4   :  { %1077 = vmatpush1.msra.mxu1 %v181_v14  ;;  %1243 = vmatpush1.msra.mxu0 %v2898_v15  ;;  %3976 = vst [vmem:[#allocation36_spill] sm:$0xff] %v3020_v12  ;;  %v3024_v14 = vld [vmem:[#allocation5 + $0xb8] sm:$0xff] }
  0xe5   :  { %1078 = vmatprep.subr.mxu1 %v164_v16  ;;  %1244 = vmatprep.subr.mxu0 %v2901_v17  ;;  %3977 = vst [vmem:[#allocation37_spill] sm:$0xff] %v3024_v14  ;;  %v3028_v16 = vld [vmem:[#allocation5 + $0xb0] sm:$0xff] }
  0xe6   :  { %v133_v23 = vpop.f32.mrf.mxu1  ;;  %1079 = vmatpush1.msra.mxu1 %v163_v18  ;;  %1112 = vmatprep.mubr.f32.mxu1 %v3846_v0  ;;  %3978 = vst [vmem:[#allocation38_spill] sm:$0xff] %v3028_v16  ;;  %v3031_v18 = vshrl.u32 %v3845_v8, 7  ;;  %v3052_v8 = vld [vmem:[%s3843_s5 + $0x8] sm:$0xff] }
  0xe7   :  { %v134_v27 = vadd.f32 %v2474_v19, %v133_v23  ;;  %1245 = vmatpush1.msra.mxu0 %v2908_v20  ;;  %2502 = vmatmul.mubr.msk.f32.vlgmr.msra.gmra.mxu1 %vm422_vm3, %v2813_v50  ;;  %v2938_v50 = vld [vmem:[#allocation5 + $0x68] sm:$0xff]  ;;  %v3035_v19 = vld [vmem:[#allocation5 + $0x98] sm:$0xff]  ;;  %v3039_v23 = vld [vmem:[#allocation5 + $0x90] sm:$0xff]  ;;  %3982 = vst [vmem:[#allocation42_spill] sm:$0xff] %v3052_v8 }
  0xe8   :  { %v2533_v30 = vpop.f32.mrf.mxu1  ;;  %1246 = vmatprep.subr.mxu0 %v2911_v21  ;;  %1297 = vmatprep.subr.mxu1 %v2913_v22  ;;  %3965 = vst [vmem:[#allocation25_spill] sm:$0xff] %v2938_v50  ;;  %3979 = vst [vmem:[#allocation39_spill] sm:$0xff] %v3035_v19 }
  0xe9   :  { %v2934_v33 = vsel %vm140_vm4, %v134_v27, %v138_v24  ;;  %1247 = vmatpush1.msra.mxu0 %v2916_v25  ;;  %1298 = vmatpush1.msra.mxu1 %v2918_v26  ;;  %3980 = vst [vmem:[#allocation40_spill] sm:$0xff] %v3039_v23  ;;  %v3042_v24 = vsub.s32 3, %v3031_v18  ;;  %v3047_v30 = vld [vmem:[#allocation5 + $0x78] sm:$0xff] }
  0xea   :  { %v2944_v35 = vsel %vm142_vm5, %v2934_v33, 0.0  ;;  %1248 = vmatprep.subr.mxu0 %v2923_v28  ;;  %1299 = vmatprep.subr.mxu1 %v2925_v29  ;;  %3981 = vst [vmem:[#allocation41_spill] sm:$0xff] %v3047_v30  ;;  %v3075_v27 = vld [vmem:[#allocation5 + $0x38] sm:$0xff] }
  0xeb   :  { %1249 = vmatpush1.msra.mxu0 %v2929_v31  ;;  %1300 = vmatpush1.msra.mxu1 %v2931_v32  ;;  %3987 = vst [vmem:[#allocation46_spill] sm:$0xff] %v3075_v27 }
  0xec   :  { %1250 = vmatprep.subr.mxu0 %v2938_v50  ;;  %1301 = vmatprep.subr.mxu1 %v2940_v34 }
  0xed   :  { %1251 = vmatpush1.msra.mxu0 %v2948_v36  ;;  %1302 = vmatpush1.msra.mxu1 %v2950_v37 }
  0xee   :  { %1252 = vmatprep.subr.mxu0 %v2954_v38  ;;  %1303 = vmatprep.subr.mxu1 %v2956_v39 }
  0xef   :  { %1253 = vmatpush1.msra.mxu0 %v2960_v40  ;;  %1304 = vmatpush1.msra.mxu1 %v2962_v41 }
  0xf0   :  { %1254 = vmatprep.subr.mxu0 %v2966_v42  ;;  %1305 = vmatprep.subr.mxu1 %v2968_v44 }
  0xf1   :  { %1255 = vmatpush1.msra.mxu0 %v2972_v46  ;;  %1306 = vmatpush1.msra.mxu1 %v2974_v48 }
  0xf2   :  { %1256 = vmatprep.subr.mxu0 %v2978_v51  ;;  %1307 = vmatprep.subr.mxu1 %v2980_v53 }
  0xf3   :  { %1257 = vmatpush1.msra.mxu0 %v2984_v55  ;;  %1290 = vmatprep.mubr.f32.mxu0 %v3846_v0 }
  0xf4   :  { %1308 = vmatpush1.msra.mxu1 %v2988_v57  ;;  %2504 = vmatmul.mubr.msk.f32.vlgmr.msra.gmra.mxu0 %vm142_vm5, %v2934_v33 }
  0xf5   :  { %1309 = vmatprep.subr.mxu1 %v2992_v59  ;;  %1361 = vmatprep.mubr.f32.mxu1 %v3846_v0  ;;  %v3056_v0 = vld [vmem:[#allocation5 + $0x70] sm:$0xff] }
  0xf6   :  { %1310 = vmatpush1.msra.mxu1 %v2996_v61  ;;  %1391 = vmatprep.subr.mxu0 %v2842_v43  ;;  %3983 = vst [vmem:[#allocation43_spill] sm:$0xff] %v3056_v0 }
  0xf7   :  { %1311 = vmatprep.subr.mxu1 %v3001_v63  ;;  %1392 = vmatpush1.msra.mxu0 %v2845_v45 }
  0xf8   :  { %1312 = vmatpush1.msra.mxu1 %v3004_v2  ;;  %1393 = vmatprep.subr.mxu0 %v2851_v47 }
  0xf9   :  { %1313 = vmatprep.subr.mxu1 %v3008_v4  ;;  %1394 = vmatpush1.msra.mxu0 %v2855_v49 }
  0xfa   :  { %1314 = vmatpush1.msra.mxu1 %v3012_v6  ;;  %1395 = vmatprep.subr.mxu0 %v2859_v52 }
  0xfb   :  { %1315 = vmatprep.subr.mxu1 %v3016_v10  ;;  %1396 = vmatpush1.msra.mxu0 %v2862_v54  ;;  %v3067_v54 = vld [vmem:[#allocation5 + $0x58] sm:$0xff] }
  0xfc   :  { %1316 = vmatpush1.msra.mxu1 %v3020_v12  ;;  %1397 = vmatprep.subr.mxu0 %v2865_v56  ;;  %3985 = vst [vmem:[#allocation44_spill] sm:$0xff] %v3067_v54 }
  0xfd   :  { %1317 = vmatprep.subr.mxu1 %v3024_v14  ;;  %1398 = vmatpush1.msra.mxu0 %v2868_v58  ;;  %v3984_v58 = vsub.s32 4, %v3031_v18 }
  0xfe   :  { %1318 = vmatpush1.msra.mxu1 %v3028_v16  ;;  %1399 = vmatprep.subr.mxu0 %v2871_v60  ;;  %v3071_v60 = vld [vmem:[#allocation5 + $0x50] sm:$0xff] }
  0xff   :  { %1319 = vmatprep.subr.mxu1 %v3035_v19  ;;  %v3063_v56 = vrot.slane %v3052_v8, %v3984_v58  ;;  %1400 = vmatpush1.msra.mxu0 %v2874_v62  ;;  %3986 = vst [vmem:[#allocation45_spill] sm:$0xff] %v3071_v60  ;;  %v3079_v58 = vld [vmem:[#allocation5 + $0x30] sm:$0xff] }
 0x100   :  { %1320 = vmatpush1.msra.mxu1 %v3039_v23  ;;  %1401 = vmatprep.subr.mxu0 %v2877_v1  ;;  %3988 = vst [vmem:[#allocation47_spill] sm:$0xff] %v3079_v58  ;;  %v3083_v1 = vld [vmem:[#allocation5 + $0x18] sm:$0xff] }
 0x101   :  { %1321 = vmatprep.subr.mxu1 %v3047_v30  ;;  %1402 = vmatpush1.msra.mxu0 %v2880_v3  ;;  %3989 = vst [vmem:[#allocation48_spill] sm:$0xff] %v3083_v1  ;;  %v3087_v3 = vld [vmem:[#allocation5 + $0x10] sm:$0xff] }
 0x102   :  { %1322 = vmatpush1.msra.mxu1 %v3056_v0  ;;  %1403 = vmatprep.subr.mxu0 %v2883_v5  ;;  %3990 = vst [vmem:[#allocation49_spill] sm:$0xff] %v3087_v3 }
 0x103   :  { %1323 = vmatprep.subr.mxu1 %v3067_v54  ;;  %1404 = vmatpush1.msra.mxu0 %v2886_v7 }
 0x104   :  { %1324 = vmatpush1.msra.mxu1 %v3071_v60  ;;  %1405 = vmatprep.subr.mxu0 %v2889_v9 }
 0x105   :  { %1325 = vmatprep.subr.mxu1 %v3075_v27  ;;  %1406 = vmatpush1.msra.mxu0 %v2892_v11 }
 0x106   :  { %1326 = vmatpush1.msra.mxu1 %v3079_v58  ;;  %1407 = vmatprep.subr.mxu0 %v2895_v13 }
 0x107   :  { %1327 = vmatprep.subr.mxu1 %v3083_v1  ;;  %1408 = vmatpush1.msra.mxu0 %v2898_v15 }
 0x108   :  { %1328 = vmatpush1.msra.mxu1 %v3087_v3  ;;  %1409 = vmatprep.subr.mxu0 %v2901_v17 }
 0x109   :  { %2505 = vmatmul.mubr.msk.f32.vlgmr.msra.gmra.mxu1 %vm142_vm5, %v2934_v33  ;;  %1462 = vmatprep.subr.mxu1 %v2913_v22  ;;  %v3870_v33 = vsub.s32 6, %v3031_v18 }
 0x10a   :  { %1463 = vmatpush1.msra.mxu1 %v2918_v26  ;;  %1410 = vmatpush1.msra.mxu0 %v2908_v20 }
 0x10b   :  { %1464 = vmatprep.subr.mxu1 %v2925_v29  ;;  %1411 = vmatprep.subr.mxu0 %v2911_v21 }
 0x10c   :  { %1465 = vmatpush1.msra.mxu1 %v2931_v32  ;;  %1412 = vmatpush1.msra.mxu0 %v2916_v25  ;;  %v3872_v25 = vsub.s32 5, %v3031_v18 }
 0x10d   :  { %1466 = vmatprep.subr.mxu1 %v2940_v34  ;;  %1413 = vmatprep.subr.mxu0 %v2923_v28 }
 0x10e   :  { %1467 = vmatpush1.msra.mxu1 %v2950_v37  ;;  %1414 = vmatpush1.msra.mxu0 %v2929_v31  ;;  %v3871_v31 = vsub.s32 7, %v3031_v18 }
 0x10f   :  { %1468 = vmatprep.subr.mxu1 %v2956_v39  ;;  %1415 = vmatprep.subr.mxu0 %v2938_v50  ;;  %v389_v50 = vrot.slane %v3052_v8, %v3870_v33  ;;  %v3991_v33 = vmov 0.0  }
 0x110   :  { %1469 = vmatpush1.msra.mxu1 %v2962_v41  ;;  %1416 = vmatpush1.msra.mxu0 %v2948_v36  ;;  %v385_v36 = vrot.slane %v3052_v8, %v3872_v25 }
 0x111   :  { %1470 = vmatprep.subr.mxu1 %v2968_v44  ;;  %1417 = vmatprep.subr.mxu0 %v2954_v38 }
 0x112   :  { %1471 = vmatpush1.msra.mxu1 %v2974_v48  ;;  %1418 = vmatpush1.msra.mxu0 %v2960_v40  ;;  %v393_v40 = vrot.slane %v3052_v8, %v3871_v31  ;;  %v3162_v31 = vld [vmem:[%s3843_s5] sm:$0xff] }
 0x113   :  { %1472 = vmatprep.subr.mxu1 %v2980_v53  ;;  %1419 = vmatprep.subr.mxu0 %v2966_v42  ;;  %v345_v25 = vrot.slane %v3162_v31, %v3042_v24 }
 0x114   :  { %1473 = vmatpush1.msra.mxu1 %v2988_v57  ;;  %1420 = vmatpush1.msra.mxu0 %v2972_v46 }
 0x115   :  { %1474 = vmatprep.subr.mxu1 %v2992_v59  ;;  %1421 = vmatprep.subr.mxu0 %v2978_v51 }
 0x116   :  { %1475 = vmatpush1.msra.mxu1 %v2996_v61  ;;  %1422 = vmatpush1.msra.mxu0 %v2984_v55 }
 0x117   :  { %1476 = vmatprep.subr.mxu1 %v3001_v63  ;;  %1455 = vmatprep.mubr.f32.mxu0 %v3991_v33 }
 0x118   :  { %1477 = vmatpush1.msra.mxu1 %v3004_v2  ;;  %1526 = vmatprep.mubr.f32.mxu1 %v3991_v33 }
 0x119   :  { %1478 = vmatprep.subr.mxu1 %v3008_v4  ;;  %1611 = vmatprep.subr.mxu0 %v2842_v43 }
 0x11a   :  { %1479 = vmatpush1.msra.mxu1 %v3012_v6 }
 0x11b   :  { %1480 = vmatprep.subr.mxu1 %v3016_v10 }
 0x11c   :  { %1481 = vmatpush1.msra.mxu1 %v3020_v12 }
 0x11d   :  { %1482 = vmatprep.subr.mxu1 %v3024_v14 }
 0x11e   :  { %1483 = vmatpush1.msra.mxu1 %v3028_v16 }
 0x11f   :  { %1484 = vmatprep.subr.mxu1 %v3035_v19 }
 0x120   :  { %1485 = vmatpush1.msra.mxu1 %v3039_v23 }
 0x121   :  { %1486 = vmatprep.subr.mxu1 %v3047_v30 }
 0x122   :  { %1487 = vmatpush1.msra.mxu1 %v3056_v0  ;;  %v4001_v0 = vrot.slane %v3052_v8, %v3042_v24 }
 0x123   :  { %1488 = vmatprep.subr.mxu1 %v3067_v54 }
 0x124   :  { %1489 = vmatpush1.msra.mxu1 %v3071_v60 }
 0x125   :  { %1490 = vmatprep.subr.mxu1 %v3075_v27 }
 0x126   :  { %1491 = vmatpush1.msra.mxu1 %v3079_v58 }
 0x127   :  { %1492 = vmatprep.subr.mxu1 %v3083_v1 }
 0x128   :  { %1493 = vmatpush1.msra.mxu1 %v3087_v3  ;;  %v3176_v3 = vsub.s32 1, %v3031_v18 }
 0x129   :  { %1682 = vmatprep.subr.mxu1 %v2913_v22  ;;  %v3173_v22 = vsub.s32 2, %v3031_v18 }
 0x12a   :  { %3995 = vst [vmem:[#allocation53_spill] sm:$0xff] %v3176_v3 }
 0x12b   :  { %v373_v27 = vrot.slane %v3052_v8, %v3173_v22 }
 0x151   :  { %v617_v43 = vpop.f32.mrf.mxu0  ;;  %v546_v51 = vpop.f32.mrf.mxu1 }
 0x153   :  { %v619_v33 = vpop.f32.mrf.mxu0  ;;  %v548_v58 = vpop.f32.mrf.mxu1 }
 0x154   :  { %v3166_v55 = vadd.f32 %v619_v33, %v345_v25  ;;  %v369_v25 = vrot.slane %v3052_v8, %v3176_v3 }
 0x156   :  { %3992 = vst [vmem:[#allocation50_spill] sm:$0xff] %v3166_v55 }
 0x166   :  { %v3168_v46 = vpop.f32.mrf.mxu1  ;;  %v3170_v1 = vpop.f32.mrf.mxu0 }
 0x167   :  { %3993 = vst [vmem:[#allocation51_spill] sm:$0xff] %v3168_v46  ;;  %3994 = vst [vmem:[#allocation52_spill] sm:$0xff] %v3170_v1 }
 0x168   :  { %v3180_v42 = vpop.f32.mrf.mxu1  ;;  %v3182_v60 = vpop.f32.mrf.mxu0 }
 0x169   :  { %3996 = vst [vmem:[#allocation54_spill] sm:$0xff] %v3180_v42  ;;  %3997 = vst [vmem:[#allocation55_spill] sm:$0xff] %v3182_v60 }
 0x17c   :  { %v3186_v33 = vpop.f32.mrf.mxu1  ;;  %v901_v46 = vpop.f32.mrf.mxu0 }
 0x17d   :  { %3998 = vst [vmem:[#allocation56_spill] sm:$0xff] %v3186_v33  ;;  %v3188_v1 = vadd.f32 %v901_v46, %v373_v27 }
 0x17e   :  { %v832_v55 = vpop.f32.mrf.mxu1  ;;  %v903_v54 = vpop.f32.mrf.mxu0 }
 0x17f   :  { %3999 = vst [vmem:[#allocation57_spill] sm:$0xff] %v3188_v1  ;;  %v3190_v38 = vadd.f32 %v832_v55, %v369_v25  ;;  %v3195_v30 = vadd.f32 %v903_v54, %v4001_v0  ;;  %v3207_v55 = vsub.s32 0, %v3031_v18  ;;  %v3212_v0 = vld [vmem:[%s3843_s5 + $0x12] sm:$0xf] }
 0x181   :  { %4000 = vst [vmem:[#allocation58_spill] sm:$0xff] %v3190_v38  ;;  %4002 = vst [vmem:[#allocation59_spill] sm:$0xff] %v3195_v30  ;;  %v333_v54 = vrot.slane %v3162_v31, %v3207_v55 }
 0x182   :  { %4007 = vst [vmem:[#allocation64_spill] sm:$0xff] %v3207_v55 }
 0x192   :  { %v972_v42 = vpop.f32.mrf.mxu1  ;;  %v1043_v23 = vpop.f32.mrf.mxu0 }
 0x193   :  { %v3198_v60 = vadd.f32 %v972_v42, %v3063_v56  ;;  %v3200_v19 = vadd.f32 %v1043_v23, %v389_v50  ;;  %v3218_v56 = vrot.slane %v3212_v0, %v3207_v55  ;;  %v337_v23 = vrot.slane %v3162_v31, %v3176_v3 }
 0x194   :  { %v974_v33 = vpop.f32.mrf.mxu1  ;;  %v1045_v28 = vpop.f32.mrf.mxu0 }
 0x195   :  { %4003 = vst [vmem:[#allocation60_spill] sm:$0xff] %v3198_v60  ;;  %4004 = vst [vmem:[#allocation61_spill] sm:$0xff] %v3200_v19  ;;  %v3202_v46 = vadd.f32 %v974_v33, %v385_v36  ;;  %v3204_v27 = vadd.f32 %v1045_v28, %v393_v40  ;;  %v547_v36 = vadd.f32 %v546_v51, %v333_v54 }
 0x196   :  { %v3223_v40 = vrot.slane %v3212_v0, %v3176_v3  ;;  %v549_v19 = vadd.f32 %v548_v58, %v337_v23  ;;  %v341_v58 = vrot.slane %v3162_v31, %v3173_v22 }
 0x197   :  { %4005 = vst [vmem:[#allocation62_spill] sm:$0xff] %v3202_v46  ;;  %4006 = vst [vmem:[#allocation63_spill] sm:$0xff] %v3204_v27 }
 0x1a7   :  { %v3228_v30 = vpop.f32.mrf.mxu1 }
 0x1a8   :  { %4008 = vst [vmem:[#allocation65_spill] sm:$0xff] %v3228_v30  ;;  %v4027_v30 = vld [vmem:[#allocation28_spill] sm:$0xff] }
 0x1a9   :  { %v3230_v51 = vpop.f32.mrf.mxu1 }
 0x1aa   :  { %4009 = vst [vmem:[#allocation66_spill] sm:$0xff] %v3230_v51  ;;  %v4026_v51 = vld [vmem:[#allocation44_spill] sm:$0xff] }
 0x1b4   :  { %v1292_v50 = vpop.f32.mrf.mxu0 }
 0x1b5   :  { %v1293_v28 = vadd.f32 %v1292_v50, %v3218_v56 }
 0x1b6   :  { %v1294_v42 = vpop.f32.mrf.mxu0 }
 0x1b7   :  { %v1370_v25 = vadd.f32 %v1293_v28, %v547_v36  ;;  %v1295_v27 = vadd.f32 %v1294_v42, %v3223_v40  ;;  %v3234_v36 = vrot.slane %v3212_v0, %v3173_v22 }
 0x1b9   :  { %v2506_v33 = vmul.f32 -1.442695, %v1370_v25  ;;  %v1371_v46 = vadd.f32 %v1295_v27, %v549_v19 }
 0x1bb   :  { %2558 = vpow2.f32 %v2506_v33  ;;  %v2507_v60 = vmul.f32 -1.442695, %v1371_v46 }
 0x1bd   :  { %2560 = vpow2.f32 %v2507_v60  ;;  %v618_v60 = vadd.f32 %v617_v43, %v341_v58  ;;  %v4010_v43 = vld [vmem:[#allocation10_spill] sm:$0xff] }
 0x1be   :  { %v4014_v58 = vld [vmem:[#allocation14_spill] sm:$0xff] }
 0x1c8   :  { %v2559_v54 = vpop.eup %2558 }
 0x1c9   :  { %v1378_v50 = vadd.f32 1.0, %v2559_v54  ;;  %v1363_v1 = vpop.f32.mrf.mxu1 }
 0x1ca   :  { %v2561_v8 = vpop.eup %2560  ;;  %v1364_v46 = vadd.f32 %v1363_v1, %v3234_v36  ;;  %v4011_v1 = vld [vmem:[#allocation11_spill] sm:$0xff] }
 0x1cb   :  { %2562 = vrcp.f32 %v1378_v50  ;;  %v1365_v38 = vpop.f32.mrf.mxu1  ;;  %v1379_v19 = vadd.f32 1.0, %v2561_v8  ;;  %v4013_v8 = vld [vmem:[#allocation13_spill] sm:$0xff] }
 0x1cd   :  { %2564 = vrcp.f32 %v1379_v19  ;;  %v4015_v19 = vld [vmem:[#allocation15_spill] sm:$0xff] }
 0x1d8   :  { %v2563_v27 = vpop.eup %2562 }
 0x1d9   :  { %v1384_v28 = vmul.f32 %v2563_v27, %v1364_v46  ;;  %v4016_v46 = vld [vmem:[#allocation22_spill] sm:$0xff]  ;;  %v4017_v27 = vld [vmem:[#allocation23_spill] sm:$0xff] }
 0x1da   :  { %v2565_v23 = vpop.eup %2564 }
 0x1db   :  { %v1385_v42 = vadd.f32 %v1384_v28, %v618_v60  ;;  %v1387_v25 = vsub.f32 1.0, %v2565_v23  ;;  %v1389_v54 = vmul.f32 %v2565_v23, %v2944_v35  ;;  %v4012_v35 = vld [vmem:[#allocation12_spill] sm:$0xff]  ;;  %v4018_v60 = vld [vmem:[#allocation39_spill] sm:$0xff]  ;;  %v4021_v23 = vld [vmem:[#allocation25_spill] sm:$0xff] }
 0x1dc   :  { %v4019_v28 = vld [vmem:[#allocation24_spill] sm:$0xff] }
 0x1dd   :  { %2566 = vtanh.f32 %v1385_v42  ;;  %v4020_v42 = vld [vmem:[#allocation40_spill] sm:$0xff] }
 0x1ea   :  { %v2567_v38 = vpop.eup %2566 }
 0x1eb   :  { %v1388_v33 = vmul.f32 %v2567_v38, %v1387_v25  ;;  %v4022_v25 = vld [vmem:[#allocation41_spill] sm:$0xff]  ;;  %v4023_v38 = vld [vmem:[#allocation26_spill] sm:$0xff] }
 0x1ed   :  { %v3240_v50 = vadd.f32 %v1389_v54, %v1388_v33  ;;  %v4024_v33 = vld [vmem:[#allocation43_spill] sm:$0xff] }
 0x1ee   :  { %v4025_v54 = vld [vmem:[#allocation27_spill] sm:$0xff] }
 0x1ef   :  { %1456 = vmatmul.mubr.f32.vlgmr.msra.gmra.mxu0 %v3240_v50  ;;  %1527 = vmatmul.mubr.f32.vlgmr.msra.gmra.mxu1 %v3240_v50 }
 0x1f0   :  { %1612 = vmatpush1.msra.mxu0 %v2845_v45  ;;  %1683 = vmatpush1.msra.mxu1 %v2918_v26 }
 0x1f1   :  { %1613 = vmatprep.subr.mxu0 %v2851_v47  ;;  %1684 = vmatprep.subr.mxu1 %v2925_v29 }
 0x1f2   :  { %1614 = vmatpush1.msra.mxu0 %v2855_v49  ;;  %1685 = vmatpush1.msra.mxu1 %v2931_v32 }
 0x1f3   :  { %1615 = vmatprep.subr.mxu0 %v2859_v52  ;;  %1686 = vmatprep.subr.mxu1 %v2940_v34 }
 0x1f4   :  { %1616 = vmatpush1.msra.mxu0 %v4010_v43  ;;  %1687 = vmatpush1.msra.mxu1 %v2950_v37 }
 0x1f5   :  { %1617 = vmatprep.subr.mxu0 %v4011_v1  ;;  %1688 = vmatprep.subr.mxu1 %v2956_v39 }
 0x1f6   :  { %1618 = vmatpush1.msra.mxu0 %v4012_v35  ;;  %1689 = vmatpush1.msra.mxu1 %v2962_v41 }
 0x1f7   :  { %1619 = vmatprep.subr.mxu0 %v4013_v8  ;;  %1690 = vmatprep.subr.mxu1 %v2968_v44 }
 0x1f8   :  { %1620 = vmatpush1.msra.mxu0 %v2874_v62  ;;  %1691 = vmatpush1.msra.mxu1 %v2974_v48 }
 0x1f9   :  { %1621 = vmatprep.subr.mxu0 %v4014_v58  ;;  %1692 = vmatprep.subr.mxu1 %v2980_v53 }
 0x1fa   :  { %1622 = vmatpush1.msra.mxu0 %v4015_v19  ;;  %1693 = vmatpush1.msra.mxu1 %v2988_v57 }
 0x1fb   :  { %1623 = vmatprep.subr.mxu0 %v2883_v5  ;;  %1694 = vmatprep.subr.mxu1 %v2992_v59 }
 0x1fc   :  { %1624 = vmatpush1.msra.mxu0 %v2886_v7  ;;  %1695 = vmatpush1.msra.mxu1 %v2996_v61 }
 0x1fd   :  { %1625 = vmatprep.subr.mxu0 %v2889_v9  ;;  %1696 = vmatprep.subr.mxu1 %v3001_v63 }
 0x1fe   :  { %1626 = vmatpush1.msra.mxu0 %v2892_v11  ;;  %1697 = vmatpush1.msra.mxu1 %v3004_v2 }
 0x1ff   :  { %1627 = vmatprep.subr.mxu0 %v2895_v13  ;;  %1698 = vmatprep.subr.mxu1 %v3008_v4 }
 0x200   :  { %1628 = vmatpush1.msra.mxu0 %v2898_v15  ;;  %1699 = vmatpush1.msra.mxu1 %v3012_v6 }
 0x201   :  { %1629 = vmatprep.subr.mxu0 %v2901_v17  ;;  %1700 = vmatprep.subr.mxu1 %v3016_v10 }
 0x202   :  { %1630 = vmatpush1.msra.mxu0 %v2908_v20  ;;  %1701 = vmatpush1.msra.mxu1 %v3020_v12  ;;  %v4047_v12 = vld [vmem:[#allocation51_spill] sm:$0xff] }
 0x203   :  { %1631 = vmatprep.subr.mxu0 %v2911_v21  ;;  %1702 = vmatprep.subr.mxu1 %v3024_v14 }
 0x204   :  { %1632 = vmatpush1.msra.mxu0 %v4016_v46  ;;  %1703 = vmatpush1.msra.mxu1 %v3028_v16  ;;  %v4046_v46 = vld [vmem:[#allocation50_spill] sm:$0xff] }
 0x205   :  { %1633 = vmatprep.subr.mxu0 %v4017_v27  ;;  %1704 = vmatprep.subr.mxu1 %v4018_v60  ;;  %v4028_v27 = vld [vmem:[#allocation45_spill] sm:$0xff] }
 0x206   :  { %1634 = vmatpush1.msra.mxu0 %v4019_v28  ;;  %1705 = vmatpush1.msra.mxu1 %v4020_v42  ;;  %v4029_v60 = vld [vmem:[#allocation29_spill] sm:$0xff]  ;;  %v4030_v28 = vld [vmem:[#allocation46_spill] sm:$0xff] }
 0x207   :  { %1635 = vmatprep.subr.mxu0 %v4021_v23  ;;  %1706 = vmatprep.subr.mxu1 %v4022_v25  ;;  %v4031_v42 = vld [vmem:[#allocation30_spill] sm:$0xff]  ;;  %v4032_v23 = vld [vmem:[#allocation47_spill] sm:$0xff] }
 0x208   :  { %1636 = vmatpush1.msra.mxu0 %v4023_v38  ;;  %1707 = vmatpush1.msra.mxu1 %v4024_v33  ;;  %v4033_v25 = vld [vmem:[#allocation31_spill] sm:$0xff]  ;;  %v4034_v38 = vld [vmem:[#allocation48_spill] sm:$0xff] }
 0x209   :  { %1637 = vmatprep.subr.mxu0 %v4025_v54  ;;  %1708 = vmatprep.subr.mxu1 %v4026_v51  ;;  %v4035_v33 = vld [vmem:[#allocation32_spill] sm:$0xff]  ;;  %v4036_v54 = vmov 0.0   ;;  %v4037_v51 = vld [vmem:[#allocation49_spill] sm:$0xff] }
 0x20a   :  { %1638 = vmatpush1.msra.mxu0 %v4027_v30  ;;  %1709 = vmatpush1.msra.mxu1 %v4028_v27  ;;  %v4038_v27 = vld [vmem:[#allocation9_spill] sm:$0xff] }
 0x20b   :  { %1639 = vmatprep.subr.mxu0 %v4029_v60  ;;  %1710 = vmatprep.subr.mxu1 %v4030_v28  ;;  %v4039_v60 = vld [vmem:[#allocation21_spill] sm:$0xff]  ;;  %v3910_v28 = vmov 0  }
 0x20c   :  { %1640 = vmatpush1.msra.mxu0 %v4031_v42  ;;  %1711 = vmatpush1.msra.mxu1 %v4032_v23 }
 0x20d   :  { %1641 = vmatprep.subr.mxu0 %v4033_v25  ;;  %1712 = vmatprep.subr.mxu1 %v4034_v38  ;;  %v3314_v38 = vrot.slane %v3212_v0, %v3042_v24  ;;  %v2503_v24 = vld [vmem:[%s3840_s2 + $0x1] ss:$2 sm:$0x7] }
 0x20e   :  { %1642 = vmatpush1.msra.mxu0 %v4035_v33  ;;  %1675 = vmatprep.mubr.f32.mxu0 %v4036_v54 }
 0x20f   :  { %1713 = vmatpush1.msra.mxu1 %v4037_v51  ;;  %1746 = vmatprep.mubr.f32.mxu1 %v4036_v54  ;;  %4040 = vst [vmem:[#allocation10_spill] sm:$0xff] %v3314_v38  ;;  %v3914_v51 = vmov 1   ;;  %v3342_v54 = vrot.slane %v2503_v24, %v3176_v3 }
 0x210   :  { %1799 = vmatprep.subr.mxu0 %v4038_v27  ;;  %1870 = vmatprep.subr.mxu1 %v4039_v60  ;;  %v1137_v27 = vld [vmem:[%s3840_s2] ss:$2 sm:$0x7]  ;;  %s2737_s2 = smov 2  }
 0x211   :  { %2550 = vset.pattern.permute.xlu1 %v3910_v28  ;;  %2552 = vset.pattern.permute.xlu0 %v3910_v28  ;;  %v3326_v28 = vrot.slane %v1137_v27, %v3207_v55 }
 0x213   :  { %4042 = vst [vmem:[#allocation12_spill] sm:$0xff] %v3326_v28 }
 0x2af   :  { %v1528_v33 = vpop.f32.mrf.mxu1  ;;  %v1457_v42 = vpop.f32.mrf.mxu0 }
 0x2b1   :  { %v1530_v25 = vpop.f32.mrf.mxu1  ;;  %v1459_v6 = vpop.f32.mrf.mxu0 }
 0x2b2   :  { %v3317_v23 = vadd.f32 %v1530_v25, %v3314_v38  ;;  %v3332_v25 = vrot.slane %v1137_v27, %v3176_v3  ;;  %v1460_v4 = vadd.f32 %v1459_v6, %v3223_v40  ;;  %v1529_v6 = vadd.f32 %v1528_v33, %v3234_v36  ;;  %v4067_v33 = vld [vmem:[#allocation41_spill] sm:$0xff] }
 0x2b4   :  { %4041 = vst [vmem:[#allocation11_spill] sm:$0xff] %v3317_v23  ;;  %1539 = vperm.xlu1 %2550, %v3317_v23   ;;  %4043 = vst [vmem:[#allocation13_spill] sm:$0xff] %v3332_v25 }
 0x2b8   :  { %2551 = vset.pattern.permute.xlu1 %v3914_v51  ;;  %v3336_v51 = vrot.slane %v2503_v24, %v3207_v55  ;;  %v1458_v55 = vadd.f32 %v1457_v42, %v3218_v56 }
 0x2b9   :  { %1565 = vperm.xlu1 %2551, %v3317_v23   ;;  %v4045_v23 = vsub.s32 4, %v3031_v18 }
 0x2ba   :  { %4044 = vst [vmem:[#allocation14_spill] sm:$0xff] %v3336_v51 }
 0x2bb   :  { %v349_v60 = vrot.slane %v3162_v31, %v4045_v23 }
 0x32f   :  { %v1540_v0 = vpop.permute.xlu1 %1539 }
 0x330   :  { %v1558_v38 = vmul.f32 %v3326_v28, %v1540_v0  ;;  %v1559_v16 = vmul.f32 %v3332_v25, %v1540_v0  ;;  %v689_v28 = vadd.f32 %v4047_v12, %v349_v60  ;;  %v3352_v12 = vrot.slane %v1137_v27, %v3173_v22 }
 0x331   :  { %v4048_v60 = vsub.s32 5, %v3031_v18 }
 0x332   :  { %v1561_v14 = vadd.f32 %v1558_v38, %v4046_v46  ;;  %v1562_v17 = vadd.f32 %v1559_v16, %v689_v28 }
 0x334   :  { %v1566_v30 = vpop.permute.xlu1 %1565 }
 0x335   :  { %v1584_v21 = vmul.f32 %v3336_v51, %v1566_v30  ;;  %v1585_v20 = vmul.f32 %v3342_v54, %v1566_v30 }
 0x337   :  { %v1587_v10 = vadd.f32 %v1584_v21, %v1561_v14  ;;  %v1588_v3 = vadd.f32 %v1585_v20, %v1562_v17  ;;  %v353_v21 = vrot.slane %v3162_v31, %v4048_v60  ;;  %v1560_v20 = vmul.f32 %v3352_v12, %v1540_v0  ;;  %v4070_v60 = vld [vmem:[#allocation27_spill] sm:$0xff] }
 0x339   :  { %v1590_v23 = vadd.f32 %v1587_v10, %v1458_v55  ;;  %v1591_v25 = vadd.f32 %v1588_v3, %v1460_v4  ;;  %v3358_v10 = vrot.slane %v2503_v24, %v3173_v22 }
 0x33b   :  { %v2508_v15 = vmul.f32 -1.442695, %v1590_v23  ;;  %v2509_v13 = vmul.f32 -1.442695, %v1591_v25 }
 0x33d   :  { %2568 = vpow2.f32 %v2508_v15  ;;  %v4049_v15 = vld [vmem:[#allocation54_spill] sm:$0xff] }
 0x33e   :  { %2570 = vpow2.f32 %v2509_v13  ;;  %v691_v3 = vadd.f32 %v4049_v15, %v353_v21  ;;  %v1586_v13 = vmul.f32 %v3358_v10, %v1566_v30  ;;  %v4058_v30 = vld [vmem:[#allocation20_spill] sm:$0xff]  ;;  %v4074_v15 = vld [vmem:[#allocation29_spill] sm:$0xff] }
 0x33f   :  { %v4071_v21 = vld [vmem:[#allocation44_spill] sm:$0xff] }
 0x340   :  { %v1563_v14 = vadd.f32 %v1560_v20, %v691_v3  ;;  %v4073_v20 = vld [vmem:[#allocation45_spill] sm:$0xff]  ;;  %v4075_v3 = vld [vmem:[#allocation46_spill] sm:$0xff] }
 0x342   :  { %v1589_v55 = vadd.f32 %v1586_v13, %v1563_v14  ;;  %v4076_v13 = vld [vmem:[#allocation30_spill] sm:$0xff]  ;;  %v4079_v14 = vld [vmem:[#allocation48_spill] sm:$0xff] }
 0x34a   :  { %v2569_v46 = vpop.eup %2568 }
 0x34b   :  { %v1598_v38 = vadd.f32 1.0, %v2569_v46  ;;  %v2571_v17 = vpop.eup %2570  ;;  %v4068_v46 = vld [vmem:[#allocation26_spill] sm:$0xff] }
 0x34c   :  { %v1599_v4 = vadd.f32 1.0, %v2571_v17  ;;  %v4072_v17 = vld [vmem:[#allocation28_spill] sm:$0xff] }
 0x34d   :  { %2572 = vrcp.f32 %v1598_v38  ;;  %v4069_v38 = vld [vmem:[#allocation43_spill] sm:$0xff] }
 0x34e   :  { %2574 = vrcp.f32 %v1599_v4  ;;  %v4077_v4 = vld [vmem:[#allocation47_spill] sm:$0xff] }
 0x35a   :  { %v2573_v16 = vpop.eup %2572 }
 0x35b   :  { %v1604_v28 = vmul.f32 %v2573_v16, %v1529_v6  ;;  %v2575_v27 = vpop.eup %2574  ;;  %v4078_v6 = vld [vmem:[#allocation31_spill] sm:$0xff]  ;;  %v4080_v16 = vld [vmem:[#allocation32_spill] sm:$0xff] }
 0x35c   :  { %v1607_v22 = vsub.f32 1.0, %v2575_v27  ;;  %v1609_v0 = vmul.f32 %v2575_v27, %v3240_v50  ;;  %v4060_v50 = vld [vmem:[#allocation22_spill] sm:$0xff]  ;;  %v4083_v27 = vld [vmem:[#allocation21_spill] sm:$0xff] }
 0x35d   :  { %v1605_v42 = vadd.f32 %v1604_v28, %v1589_v55  ;;  %v4081_v55 = vmov 0.0   ;;  %v4082_v28 = vld [vmem:[#allocation49_spill] sm:$0xff] }
 0x35f   :  { %2576 = vtanh.f32 %v1605_v42  ;;  %v3433_v42 = vld [vmem:[#allocation5 + $0x1e8] sm:$0xff] }
 0x36c   :  { %v2577_v24 = vpop.eup %2576 }
 0x36d   :  { %v1608_v25 = vmul.f32 %v2577_v24, %v1607_v22 }
 0x36f   :  { %v3365_v23 = vadd.f32 %v1609_v0, %v1608_v25  ;;  %v4084_v25 = vld [vmem:[#allocation10_spill] sm:$0xff] }
 0x371   :  { %1676 = vmatmul.mubr.f32.vlgmr.msra.gmra.mxu0 %v3365_v23  ;;  %1747 = vmatmul.mubr.f32.vlgmr.msra.gmra.mxu1 %v3365_v23 }
 0x372   :  { %1800 = vmatpush1.msra.mxu0 %v2845_v45  ;;  %1871 = vmatpush1.msra.mxu1 %v2918_v26  ;;  %v4050_v45 = vld [vmem:[#allocation16_spill] sm:$0xff] }
 0x373   :  { %1801 = vmatprep.subr.mxu0 %v2851_v47  ;;  %1872 = vmatprep.subr.mxu1 %v2925_v29  ;;  %v4051_v47 = vld [vmem:[#allocation33_spill] sm:$0xff] }
 0x374   :  { %1802 = vmatpush1.msra.mxu0 %v2855_v49  ;;  %1873 = vmatpush1.msra.mxu1 %v2931_v32  ;;  %v4052_v49 = vld [vmem:[#allocation17_spill] sm:$0xff] }
 0x375   :  { %1803 = vmatprep.subr.mxu0 %v2859_v52  ;;  %1874 = vmatprep.subr.mxu1 %v2940_v34  ;;  %v4053_v52 = vld [vmem:[#allocation34_spill] sm:$0xff] }
 0x376   :  { %1804 = vmatpush1.msra.mxu0 %v4010_v43  ;;  %1875 = vmatpush1.msra.mxu1 %v2950_v37  ;;  %v4061_v43 = vld [vmem:[#allocation38_spill] sm:$0xff] }
 0x377   :  { %1805 = vmatprep.subr.mxu0 %v4011_v1  ;;  %1876 = vmatprep.subr.mxu1 %v2956_v39  ;;  %v4062_v1 = vld [vmem:[#allocation23_spill] sm:$0xff] }
 0x378   :  { %1806 = vmatpush1.msra.mxu0 %v4012_v35  ;;  %1877 = vmatpush1.msra.mxu1 %v2962_v41  ;;  %v4063_v35 = vld [vmem:[#allocation39_spill] sm:$0xff] }
 0x379   :  { %1807 = vmatprep.subr.mxu0 %v4013_v8  ;;  %1878 = vmatprep.subr.mxu1 %v2968_v44  ;;  %v4064_v8 = vld [vmem:[#allocation24_spill] sm:$0xff] }
 0x37a   :  { %1808 = vmatpush1.msra.mxu0 %v2874_v62  ;;  %1879 = vmatpush1.msra.mxu1 %v2974_v48  ;;  %v4054_v62 = vld [vmem:[#allocation18_spill] sm:$0xff] }
 0x37b   :  { %1809 = vmatprep.subr.mxu0 %v4014_v58  ;;  %1880 = vmatprep.subr.mxu1 %v2980_v53  ;;  %v4065_v58 = vld [vmem:[#allocation40_spill] sm:$0xff] }
 0x37c   :  { %1810 = vmatpush1.msra.mxu0 %v4015_v19  ;;  %1881 = vmatpush1.msra.mxu1 %v2988_v57  ;;  %v4066_v19 = vld [vmem:[#allocation25_spill] sm:$0xff] }
 0x37d   :  { %1811 = vmatprep.subr.mxu0 %v2883_v5  ;;  %1882 = vmatprep.subr.mxu1 %v2992_v59  ;;  %v4055_v5 = vld [vmem:[#allocation35_spill] sm:$0xff] }
 0x37e   :  { %1812 = vmatpush1.msra.mxu0 %v2886_v7  ;;  %1883 = vmatpush1.msra.mxu1 %v2996_v61  ;;  %v4056_v7 = vld [vmem:[#allocation19_spill] sm:$0xff] }
 0x37f   :  { %1813 = vmatprep.subr.mxu0 %v2889_v9  ;;  %1884 = vmatprep.subr.mxu1 %v3001_v63  ;;  %v4057_v9 = vld [vmem:[#allocation36_spill] sm:$0xff] }
 0x380   :  { %1814 = vmatpush1.msra.mxu0 %v2892_v11  ;;  %1885 = vmatpush1.msra.mxu1 %v3004_v2  ;;  %v4059_v11 = vld [vmem:[#allocation37_spill] sm:$0xff] }
 0x381   :  { %1815 = vmatprep.subr.mxu0 %v4050_v45  ;;  %1886 = vmatprep.subr.mxu1 %v4051_v47  ;;  %v4085_v45 = vld [vmem:[#allocation11_spill] sm:$0xff] }
 0x382   :  { %1816 = vmatpush1.msra.mxu0 %v4052_v49  ;;  %1887 = vmatpush1.msra.mxu1 %v4053_v52 }
 0x383   :  { %1817 = vmatprep.subr.mxu0 %v4054_v62  ;;  %1888 = vmatprep.subr.mxu1 %v4055_v5  ;;  %v4087_v62 = vmov 0  }
 0x384   :  { %1818 = vmatpush1.msra.mxu0 %v4056_v7  ;;  %1889 = vmatpush1.msra.mxu1 %v4057_v9  ;;  %v4088_v7 = vmov 1  }
 0x385   :  { %1819 = vmatprep.subr.mxu0 %v4058_v30  ;;  %1890 = vmatprep.subr.mxu1 %v4059_v11  ;;  %v4089_v30 = vsub.s32 6, %v3031_v18 }
 0x386   :  { %1820 = vmatpush1.msra.mxu0 %v4060_v50  ;;  %1891 = vmatpush1.msra.mxu1 %v4061_v43 }
 0x387   :  { %1821 = vmatprep.subr.mxu0 %v4062_v1  ;;  %1892 = vmatprep.subr.mxu1 %v4063_v35  ;;  %v357_v50 = vrot.slane %v3162_v31, %v4089_v30  ;;  %v4090_v1 = vsub.s32 7, %v3031_v18 }
 0x388   :  { %1822 = vmatpush1.msra.mxu0 %v4064_v8  ;;  %1893 = vmatpush1.msra.mxu1 %v4065_v58 }
 0x389   :  { %1823 = vmatprep.subr.mxu0 %v4066_v19  ;;  %1894 = vmatprep.subr.mxu1 %v4067_v33  ;;  %v361_v8 = vrot.slane %v3162_v31, %v4090_v1 }
 0x38a   :  { %1824 = vmatpush1.msra.mxu0 %v4068_v46  ;;  %1895 = vmatpush1.msra.mxu1 %v4069_v38 }
 0x38b   :  { %1825 = vmatprep.subr.mxu0 %v4070_v60  ;;  %1896 = vmatprep.subr.mxu1 %v4071_v21  ;;  %v4091_v60 = vld [vmem:[#allocation52_spill] sm:$0xff] }
 0x38c   :  { %1826 = vmatpush1.msra.mxu0 %v4072_v17  ;;  %1897 = vmatpush1.msra.mxu1 %v4073_v20  ;;  %v760_v17 = vadd.f32 %v4091_v60, %v357_v50 }
 0x38d   :  { %1827 = vmatprep.subr.mxu0 %v4074_v15  ;;  %1898 = vmatprep.subr.mxu1 %v4075_v3  ;;  %v4092_v15 = vld [vmem:[#allocation12_spill] sm:$0xff] }
 0x38e   :  { %1828 = vmatpush1.msra.mxu0 %v4076_v13  ;;  %1899 = vmatpush1.msra.mxu1 %v4077_v4 }
 0x38f   :  { %1829 = vmatprep.subr.mxu0 %v4078_v6  ;;  %1900 = vmatprep.subr.mxu1 %v4079_v14 }
 0x390   :  { %1830 = vmatpush1.msra.mxu0 %v4080_v16  ;;  %1863 = vmatprep.mubr.f32.mxu0 %v4081_v55  ;;  %v4093_v16 = vld [vmem:[#allocation13_spill] sm:$0xff] }
 0x391   :  { %1901 = vmatpush1.msra.mxu1 %v4082_v28  ;;  %1934 = vmatprep.mubr.f32.mxu1 %v4081_v55 }
 0x392   :  { %1987 = vmatprep.subr.mxu0 %v3433_v42  ;;  %2058 = vmatprep.subr.mxu1 %v4083_v27 }
 0x431   :  { %v1748_v22 = vpop.f32.mrf.mxu1  ;;  %v1677_v6 = vpop.f32.mrf.mxu0 }
 0x432   :  { %v1678_v30 = vadd.f32 %v1677_v6, %v3218_v56 }
 0x433   :  { %v1750_v24 = vpop.f32.mrf.mxu1 }
 0x434   :  { %v1751_v0 = vadd.f32 %v1750_v24, %v4084_v25  ;;  %v4094_v24 = vld [vmem:[#allocation55_spill] sm:$0xff] }
 0x436   :  { %v3439_v49 = vadd.f32 %v1751_v0, %v4085_v45  ;;  %v762_v0 = vadd.f32 %v4094_v24, %v361_v8 }
 0x438   :  { %4086 = vst [vmem:[#allocation15_spill] sm:$0xff] %v3439_v49  ;;  %1769 = vperm.xlu1 %2551, %v3439_v49   ;;  %1759 = vperm.xlu0 %2552, %v3439_v49   ;;  %v1679_v49 = vpop.f32.mrf.mxu0 }
 0x439   :  { %v1680_v60 = vadd.f32 %v1679_v49, %v3223_v40 }
 0x43c   :  { %2553 = vset.pattern.permute.xlu1 %v4087_v62  ;;  %2554 = vset.pattern.permute.xlu0 %v4088_v7 }
 0x4b3   :  { %v1770_v19 = vpop.permute.xlu1 %1769  ;;  %v1760_v46 = vpop.permute.xlu0 %1759 }
 0x4b4   :  { %v1762_v13 = vmul.f32 %v1760_v46, %v4092_v15  ;;  %v1763_v27 = vmul.f32 %v1760_v46, %v4093_v16  ;;  %v1772_v45 = vmul.f32 %v1770_v19, %v3336_v51  ;;  %v1773_v31 = vmul.f32 %v1770_v19, %v3342_v54 }
 0x4b5   :  { %v1774_v49 = vmul.f32 %v1770_v19, %v3358_v10  ;;  %v3474_v19 = vld [vmem:[#allocation5 + $0x1c8] sm:$0xff] }
 0x4b6   :  { %v1765_v7 = vadd.f32 %v1762_v13, %v760_v17  ;;  %v1766_v62 = vadd.f32 %v1763_v27, %v762_v0  ;;  %v4095_v17 = vld [vmem:[#allocation64_spill] sm:$0xff]  ;;  %v4096_v13 = vld [vmem:[#allocation42_spill] sm:$0xff] }
 0x4b7   :  { %v365_v6 = vrot.slane %v4096_v13, %v4095_v17  ;;  %v4097_v27 = vld [vmem:[#allocation56_spill] sm:$0xff]  ;;  %v3478_v13 = vld [vmem:[#allocation5 + $0x1c0] sm:$0xff] }
 0x4b8   :  { %v1775_v18 = vadd.f32 %v1772_v45, %v1765_v7  ;;  %v1776_v25 = vadd.f32 %v1773_v31, %v1766_v62  ;;  %v1764_v45 = vmul.f32 %v1760_v46, %v3352_v12 }
 0x4b9   :  { %v831_v0 = vadd.f32 %v4097_v27, %v365_v6  ;;  %v3486_v6 = vld [vmem:[#allocation5 + $0x1a0] sm:$0xff] }
 0x4ba   :  { %v1778_v1 = vadd.f32 %v1775_v18, %v1678_v30  ;;  %v1779_v15 = vadd.f32 %v1776_v25, %v1680_v60  ;;  %v1749_v18 = vadd.f32 %v1748_v22, %v3234_v36  ;;  %v3470_v22 = vld [vmem:[#allocation5 + $0x1e0] sm:$0xff] }
 0x4bb   :  { %v1767_v30 = vadd.f32 %v1764_v45, %v831_v0  ;;  %v4098_v45 = vld [vmem:[#allocation10_spill] sm:$0xff] }
 0x4bc   :  { %v2510_v50 = vmul.f32 -1.442695, %v1778_v1  ;;  %v2511_v16 = vmul.f32 -1.442695, %v1779_v15 }
 0x4bd   :  { %v1777_v15 = vadd.f32 %v1774_v49, %v1767_v30  ;;  %v4103_v49 = vld [vmem:[#allocation13_spill] sm:$0xff] }
 0x4be   :  { %2578 = vpow2.f32 %v2510_v50 }
 0x4bf   :  { %2580 = vpow2.f32 %v2511_v16 }
 0x4cb   :  { %v2579_v8 = vpop.eup %2578 }
 0x4cc   :  { %v1786_v24 = vadd.f32 1.0, %v2579_v8  ;;  %v2581_v7 = vpop.eup %2580 }
 0x4cd   :  { %v1787_v62 = vadd.f32 1.0, %v2581_v7  ;;  %v4099_v7 = vld [vmem:[#allocation15_spill] sm:$0xff] }
 0x4ce   :  { %2582 = vrcp.f32 %v1786_v24 }
 0x4cf   :  { %2584 = vrcp.f32 %v1787_v62 }
 0x4db   :  { %v2583_v25 = vpop.eup %2582 }
 0x4dc   :  { %v1792_v16 = vmul.f32 %v2583_v25, %v1749_v18  ;;  %v2585_v1 = vpop.eup %2584 }
 0x4dd   :  { %v1795_v50 = vsub.f32 1.0, %v2585_v1  ;;  %v1797_v46 = vmul.f32 %v2585_v1, %v3365_v23  ;;  %v3482_v23 = vld [vmem:[#allocation5 + $0x1a8] sm:$0xff] }
 0x4de   :  { %v1793_v31 = vadd.f32 %v1792_v16, %v1777_v15  ;;  %v4104_v16 = vld [vmem:[#allocation58_spill] sm:$0xff] }
 0x4e0   :  { %2586 = vtanh.f32 %v1793_v31 }
 0x4ed   :  { %v2587_v60 = vpop.eup %2586 }
 0x4ee   :  { %v1796_v8 = vmul.f32 %v2587_v60, %v1795_v50  ;;  %v4105_v50 = vld [vmem:[#allocation57_spill] sm:$0xff] }
 0x4f0   :  { %v3466_v24 = vadd.f32 %v1797_v46, %v1796_v8 }
 0x4f2   :  { %1864 = vmatmul.mubr.f32.vlgmr.msra.gmra.mxu0 %v3466_v24  ;;  %1935 = vmatmul.mubr.f32.vlgmr.msra.gmra.mxu1 %v3466_v24 }
 0x4f3   :  { %1988 = vmatpush1.msra.mxu0 %v3470_v22  ;;  %2059 = vmatpush1.msra.mxu1 %v2918_v26  ;;  %v3490_v26 = vld [vmem:[#allocation5 + $0x188] sm:$0xff] }
 0x4f4   :  { %1989 = vmatprep.subr.mxu0 %v3474_v19  ;;  %2060 = vmatprep.subr.mxu1 %v2925_v29  ;;  %v3494_v29 = vld [vmem:[#allocation5 + $0x180] sm:$0xff] }
 0x4f5   :  { %1990 = vmatpush1.msra.mxu0 %v3478_v13  ;;  %2061 = vmatpush1.msra.mxu1 %v2931_v32  ;;  %v3498_v32 = vld [vmem:[#allocation5 + $0x168] sm:$0xff] }
 0x4f6   :  { %1991 = vmatprep.subr.mxu0 %v3482_v23  ;;  %2062 = vmatprep.subr.mxu1 %v2940_v34  ;;  %v3502_v34 = vld [vmem:[#allocation5 + $0x160] sm:$0xff] }
 0x4f7   :  { %1992 = vmatpush1.msra.mxu0 %v3486_v6  ;;  %2063 = vmatpush1.msra.mxu1 %v2950_v37  ;;  %v3506_v37 = vld [vmem:[#allocation5 + $0x148] sm:$0xff] }
 0x4f8   :  { %1993 = vmatprep.subr.mxu0 %v3490_v26  ;;  %2064 = vmatprep.subr.mxu1 %v2956_v39  ;;  %v3510_v39 = vld [vmem:[#allocation5 + $0x140] sm:$0xff] }
 0x4f9   :  { %1994 = vmatpush1.msra.mxu0 %v3494_v29  ;;  %2065 = vmatpush1.msra.mxu1 %v2962_v41  ;;  %v3514_v41 = vld [vmem:[#allocation5 + $0x128] sm:$0xff] }
 0x4fa   :  { %1995 = vmatprep.subr.mxu0 %v3498_v32  ;;  %2066 = vmatprep.subr.mxu1 %v2968_v44  ;;  %v3518_v44 = vld [vmem:[#allocation5 + $0x120] sm:$0xff] }
 0x4fb   :  { %1996 = vmatpush1.msra.mxu0 %v3502_v34  ;;  %2067 = vmatpush1.msra.mxu1 %v2974_v48  ;;  %v3522_v48 = vld [vmem:[#allocation5 + $0x108] sm:$0xff] }
 0x4fc   :  { %1997 = vmatprep.subr.mxu0 %v3506_v37  ;;  %2068 = vmatprep.subr.mxu1 %v2980_v53  ;;  %v3526_v53 = vld [vmem:[#allocation5 + $0x100] sm:$0xff] }
 0x4fd   :  { %1998 = vmatpush1.msra.mxu0 %v3510_v39  ;;  %2069 = vmatpush1.msra.mxu1 %v2988_v57  ;;  %v3530_v57 = vld [vmem:[#allocation5 + $0xe8] sm:$0xff] }
 0x4fe   :  { %1999 = vmatprep.subr.mxu0 %v3514_v41  ;;  %2070 = vmatprep.subr.mxu1 %v2992_v59  ;;  %v3534_v59 = vld [vmem:[#allocation5 + $0xe0] sm:$0xff] }
 0x4ff   :  { %2000 = vmatpush1.msra.mxu0 %v3518_v44  ;;  %2071 = vmatpush1.msra.mxu1 %v2996_v61  ;;  %v3538_v61 = vld [vmem:[#allocation5 + $0xc8] sm:$0xff] }
 0x500   :  { %2001 = vmatprep.subr.mxu0 %v3522_v48  ;;  %2072 = vmatprep.subr.mxu1 %v3001_v63  ;;  %v3542_v63 = vld [vmem:[#allocation5 + $0xc0] sm:$0xff] }
 0x501   :  { %2002 = vmatpush1.msra.mxu0 %v3526_v53  ;;  %2073 = vmatpush1.msra.mxu1 %v3004_v2  ;;  %v3546_v2 = vld [vmem:[#allocation5 + $0xa8] sm:$0xff] }
 0x502   :  { %2003 = vmatprep.subr.mxu0 %v3530_v57  ;;  %2074 = vmatprep.subr.mxu1 %v4051_v47  ;;  %v3550_v47 = vld [vmem:[#allocation5 + $0xa0] sm:$0xff] }
 0x503   :  { %2004 = vmatpush1.msra.mxu0 %v3534_v59  ;;  %2075 = vmatpush1.msra.mxu1 %v4053_v52  ;;  %v3554_v52 = vld [vmem:[#allocation5 + $0x88] sm:$0xff] }
 0x504   :  { %2005 = vmatprep.subr.mxu0 %v3538_v61  ;;  %2076 = vmatprep.subr.mxu1 %v4055_v5  ;;  %v3558_v5 = vld [vmem:[#allocation5 + $0x80] sm:$0xff] }
 0x505   :  { %2006 = vmatpush1.msra.mxu0 %v3542_v63  ;;  %2077 = vmatpush1.msra.mxu1 %v4057_v9  ;;  %v3562_v9 = vld [vmem:[#allocation5 + $0x68] sm:$0xff] }
 0x506   :  { %2007 = vmatprep.subr.mxu0 %v3546_v2  ;;  %2078 = vmatprep.subr.mxu1 %v4059_v11  ;;  %v3566_v11 = vld [vmem:[#allocation5 + $0x60] sm:$0xff] }
 0x507   :  { %2008 = vmatpush1.msra.mxu0 %v3550_v47  ;;  %2079 = vmatpush1.msra.mxu1 %v4061_v43  ;;  %v3570_v43 = vld [vmem:[#allocation5 + $0x48] sm:$0xff] }
 0x508   :  { %2009 = vmatprep.subr.mxu0 %v3554_v52  ;;  %2080 = vmatprep.subr.mxu1 %v4063_v35  ;;  %v3574_v35 = vld [vmem:[#allocation5 + $0x40] sm:$0xff] }
 0x509   :  { %2010 = vmatpush1.msra.mxu0 %v3558_v5  ;;  %2081 = vmatpush1.msra.mxu1 %v4065_v58  ;;  %v3578_v58 = vld [vmem:[#allocation5 + $0x28] sm:$0xff] }
 0x50a   :  { %2011 = vmatprep.subr.mxu0 %v3562_v9  ;;  %2082 = vmatprep.subr.mxu1 %v4067_v33  ;;  %v3582_v33 = vld [vmem:[#allocation5 + $0x20] sm:$0xff] }
 0x50b   :  { %2012 = vmatpush1.msra.mxu0 %v3566_v11  ;;  %2083 = vmatpush1.msra.mxu1 %v4069_v38  ;;  %v3586_v38 = vld [vmem:[#allocation5 + $0x8] sm:$0xff] }
 0x50c   :  { %2013 = vmatprep.subr.mxu0 %v3570_v43  ;;  %2084 = vmatprep.subr.mxu1 %v4071_v21  ;;  %v3590_v21 = vld [vmem:[#allocation5] sm:$0xff] }
 0x50d   :  { %2014 = vmatpush1.msra.mxu0 %v3574_v35  ;;  %2085 = vmatpush1.msra.mxu1 %v4073_v20  ;;  %v3597_v20 = vld [vmem:[#allocation5 + $0x1f8] sm:$0xff] }
 0x50e   :  { %2015 = vmatprep.subr.mxu0 %v3578_v58  ;;  %2086 = vmatprep.subr.mxu1 %v4075_v3 }
 0x50f   :  { %2016 = vmatpush1.msra.mxu0 %v3582_v33  ;;  %2087 = vmatpush1.msra.mxu1 %v4077_v4 }
 0x510   :  { %2017 = vmatprep.subr.mxu0 %v3586_v38  ;;  %2088 = vmatprep.subr.mxu1 %v4079_v14 }
 0x511   :  { %2018 = vmatpush1.msra.mxu0 %v3590_v21  ;;  %2051 = vmatprep.mubr.f32.mxu0 %v4081_v55 }
 0x512   :  { %2089 = vmatpush1.msra.mxu1 %v4082_v28  ;;  %2122 = vmatprep.mubr.f32.mxu1 %v4081_v55  ;;  %v4101_v28 = vmov 0  }
 0x513   :  { %2175 = vmatprep.subr.mxu0 %v3433_v42  ;;  %2246 = vmatprep.subr.mxu1 %v3597_v20  ;;  %v4102_v42 = vld [vmem:[#allocation12_spill] sm:$0xff] }
 0x5b2   :  { %v1936_v3 = vpop.f32.mrf.mxu1  ;;  %v1865_v18 = vpop.f32.mrf.mxu0 }
 0x5b3   :  { %v1866_v1 = vadd.f32 %v1865_v18, %v3218_v56 }
 0x5b4   :  { %v1938_v4 = vpop.f32.mrf.mxu1 }
 0x5b5   :  { %v1939_v14 = vadd.f32 %v1938_v4, %v4098_v45 }
 0x5b7   :  { %v3602_v27 = vadd.f32 %v1939_v14, %v4099_v7  ;;  %v1867_v14 = vpop.f32.mrf.mxu0 }
 0x5b8   :  { %v1868_v7 = vadd.f32 %v1867_v14, %v3223_v40 }
 0x5b9   :  { %4100 = vst [vmem:[#allocation9_spill] sm:$0xff] %v3602_v27  ;;  %1957 = vperm.xlu0 %2554, %v3602_v27   ;;  %1947 = vperm.xlu1 %2553, %v3602_v27  }
 0x5bd   :  { %2556 = vset.pattern.permute.xlu0 %v4101_v28 }
 0x634   :  { %v1958_v0 = vpop.permute.xlu0 %1957  ;;  %v1948_v30 = vpop.permute.xlu1 %1947 }
 0x635   :  { %v1950_v62 = vmul.f32 %v1948_v30, %v4102_v42  ;;  %v1951_v25 = vmul.f32 %v1948_v30, %v4103_v49  ;;  %v1960_v15 = vmul.f32 %v1958_v0, %v3336_v51  ;;  %v1961_v46 = vmul.f32 %v1958_v0, %v3342_v54 }
 0x637   :  { %v1953_v31 = vadd.f32 %v1950_v62, %v4104_v16  ;;  %v1954_v60 = vadd.f32 %v1951_v25, %v4105_v50  ;;  %v1952_v62 = vmul.f32 %v1948_v30, %v3352_v12  ;;  %v4106_v25 = vld [vmem:[#allocation59_spill] sm:$0xff] }
 0x639   :  { %v1963_v8 = vadd.f32 %v1960_v15, %v1953_v31  ;;  %v1964_v28 = vadd.f32 %v1961_v46, %v1954_v60  ;;  %v1955_v15 = vadd.f32 %v1952_v62, %v4106_v25  ;;  %v1937_v31 = vadd.f32 %v1936_v3, %v3234_v36  ;;  %v3625_v3 = vld [vmem:[#allocation5 + $0x1f0] sm:$0xff]  ;;  %v3637_v46 = vld [vmem:[#allocation5 + $0x1b8] sm:$0xff] }
 0x63a   :  { %v4109_v62 = vld [vmem:[#allocation12_spill] sm:$0xff] }
 0x63b   :  { %v1966_v4 = vadd.f32 %v1963_v8, %v1866_v1  ;;  %v1967_v42 = vadd.f32 %v1964_v28, %v1868_v7  ;;  %v1962_v1 = vmul.f32 %v1958_v0, %v3358_v10  ;;  %v3629_v0 = vld [vmem:[#allocation5 + $0x1d8] sm:$0xff] }
 0x63d   :  { %v2512_v17 = vmul.f32 -1.442695, %v1966_v4  ;;  %v2513_v49 = vmul.f32 -1.442695, %v1967_v42  ;;  %v1965_v60 = vadd.f32 %v1962_v1, %v1955_v15  ;;  %v4107_v4 = vld [vmem:[#allocation9_spill] sm:$0xff] }
 0x63f   :  { %2588 = vpow2.f32 %v2512_v17 }
 0x640   :  { %2590 = vpow2.f32 %v2513_v49 }
 0x64c   :  { %v2589_v51 = vpop.eup %2588 }
 0x64d   :  { %v1974_v27 = vadd.f32 1.0, %v2589_v51  ;;  %v2591_v18 = vpop.eup %2590 }
 0x64e   :  { %v1975_v16 = vadd.f32 1.0, %v2591_v18 }
 0x64f   :  { %2592 = vrcp.f32 %v1974_v27 }
 0x650   :  { %2594 = vrcp.f32 %v1975_v16  ;;  %v4110_v16 = vld [vmem:[#allocation13_spill] sm:$0xff] }
 0x65c   :  { %v2593_v50 = vpop.eup %2592 }
 0x65d   :  { %v1980_v17 = vmul.f32 %v2593_v50, %v1937_v31  ;;  %v2595_v42 = vpop.eup %2594  ;;  %v4111_v31 = vld [vmem:[#allocation60_spill] sm:$0xff]  ;;  %v4112_v50 = vld [vmem:[#allocation14_spill] sm:$0xff] }
 0x65e   :  { %v1983_v49 = vsub.f32 1.0, %v2595_v42  ;;  %v1985_v30 = vmul.f32 %v2595_v42, %v3466_v24  ;;  %v3633_v24 = vld [vmem:[#allocation5 + $0x1d0] sm:$0xff] }
 0x65f   :  { %v1981_v7 = vadd.f32 %v1980_v17, %v1965_v60 }
 0x661   :  { %2596 = vtanh.f32 %v1981_v7 }
 0x66e   :  { %v2597_v51 = vpop.eup %2596 }
 0x66f   :  { %v1984_v27 = vmul.f32 %v2597_v51, %v1983_v49  ;;  %v4113_v49 = vld [vmem:[#allocation62_spill] sm:$0xff] }
 0x671   :  { %v3620_v8 = vadd.f32 %v1985_v30, %v1984_v27 }
 0x673   :  { %2052 = vmatmul.mubr.f32.vlgmr.msra.gmra.mxu0 %v3620_v8  ;;  %2123 = vmatmul.mubr.f32.vlgmr.msra.gmra.mxu1 %v3620_v8 }
 0x674   :  { %2176 = vmatpush1.msra.mxu0 %v3470_v22  ;;  %2247 = vmatpush1.msra.mxu1 %v3625_v3  ;;  %v3641_v22 = vld [vmem:[#allocation5 + $0x1b0] sm:$0xff] }
 0x675   :  { %2177 = vmatprep.subr.mxu0 %v3474_v19  ;;  %2248 = vmatprep.subr.mxu1 %v3629_v0  ;;  %v3645_v19 = vld [vmem:[#allocation5 + $0x198] sm:$0xff] }
 0x676   :  { %2178 = vmatpush1.msra.mxu0 %v3478_v13  ;;  %2249 = vmatpush1.msra.mxu1 %v3633_v24  ;;  %v3649_v13 = vld [vmem:[#allocation5 + $0x190] sm:$0xff] }
 0x677   :  { %2179 = vmatprep.subr.mxu0 %v3482_v23  ;;  %2250 = vmatprep.subr.mxu1 %v3637_v46  ;;  %v3653_v23 = vld [vmem:[#allocation5 + $0x178] sm:$0xff] }
 0x678   :  { %2180 = vmatpush1.msra.mxu0 %v3486_v6  ;;  %2251 = vmatpush1.msra.mxu1 %v3641_v22  ;;  %v3657_v6 = vld [vmem:[#allocation5 + $0x170] sm:$0xff] }
 0x679   :  { %2181 = vmatprep.subr.mxu0 %v3490_v26  ;;  %2252 = vmatprep.subr.mxu1 %v3645_v19  ;;  %v3661_v26 = vld [vmem:[#allocation5 + $0x158] sm:$0xff] }
 0x67a   :  { %2182 = vmatpush1.msra.mxu0 %v3494_v29  ;;  %2253 = vmatpush1.msra.mxu1 %v3649_v13  ;;  %v3665_v29 = vld [vmem:[#allocation5 + $0x150] sm:$0xff] }
 0x67b   :  { %2183 = vmatprep.subr.mxu0 %v3498_v32  ;;  %2254 = vmatprep.subr.mxu1 %v3653_v23  ;;  %v3669_v32 = vld [vmem:[#allocation5 + $0x138] sm:$0xff] }
 0x67c   :  { %2184 = vmatpush1.msra.mxu0 %v3502_v34  ;;  %2255 = vmatpush1.msra.mxu1 %v3657_v6  ;;  %v3673_v34 = vld [vmem:[#allocation5 + $0x130] sm:$0xff] }
 0x67d   :  { %2185 = vmatprep.subr.mxu0 %v3506_v37  ;;  %2256 = vmatprep.subr.mxu1 %v3661_v26  ;;  %v3677_v37 = vld [vmem:[#allocation5 + $0x118] sm:$0xff] }
 0x67e   :  { %2186 = vmatpush1.msra.mxu0 %v3510_v39  ;;  %2257 = vmatpush1.msra.mxu1 %v3665_v29  ;;  %v3681_v39 = vld [vmem:[#allocation5 + $0x110] sm:$0xff] }
 0x67f   :  { %2187 = vmatprep.subr.mxu0 %v3514_v41  ;;  %2258 = vmatprep.subr.mxu1 %v3669_v32  ;;  %v3685_v41 = vld [vmem:[#allocation5 + $0xf8] sm:$0xff] }
 0x680   :  { %2188 = vmatpush1.msra.mxu0 %v3518_v44  ;;  %2259 = vmatpush1.msra.mxu1 %v3673_v34  ;;  %v3689_v44 = vld [vmem:[#allocation5 + $0xf0] sm:$0xff] }
 0x681   :  { %2189 = vmatprep.subr.mxu0 %v3522_v48  ;;  %2260 = vmatprep.subr.mxu1 %v3677_v37  ;;  %v3693_v48 = vld [vmem:[#allocation5 + $0xd8] sm:$0xff] }
 0x682   :  { %2190 = vmatpush1.msra.mxu0 %v3526_v53  ;;  %2261 = vmatpush1.msra.mxu1 %v3681_v39  ;;  %v3697_v53 = vld [vmem:[#allocation5 + $0xd0] sm:$0xff] }
 0x683   :  { %2191 = vmatprep.subr.mxu0 %v3530_v57  ;;  %2262 = vmatprep.subr.mxu1 %v3685_v41  ;;  %v3701_v57 = vld [vmem:[#allocation5 + $0xb8] sm:$0xff] }
 0x684   :  { %2192 = vmatpush1.msra.mxu0 %v3534_v59  ;;  %2263 = vmatpush1.msra.mxu1 %v3689_v44  ;;  %v3705_v59 = vld [vmem:[#allocation5 + $0xb0] sm:$0xff] }
 0x685   :  { %2193 = vmatprep.subr.mxu0 %v3538_v61  ;;  %2264 = vmatprep.subr.mxu1 %v3693_v48  ;;  %v3709_v61 = vld [vmem:[#allocation5 + $0x98] sm:$0xff] }
 0x686   :  { %2194 = vmatpush1.msra.mxu0 %v3542_v63  ;;  %2265 = vmatpush1.msra.mxu1 %v3697_v53  ;;  %v3713_v63 = vld [vmem:[#allocation5 + $0x90] sm:$0xff] }
 0x687   :  { %2195 = vmatprep.subr.mxu0 %v3546_v2  ;;  %2266 = vmatprep.subr.mxu1 %v3701_v57  ;;  %v3717_v2 = vld [vmem:[#allocation5 + $0x78] sm:$0xff] }
 0x688   :  { %2196 = vmatpush1.msra.mxu0 %v3550_v47  ;;  %2267 = vmatpush1.msra.mxu1 %v3705_v59  ;;  %v3721_v47 = vld [vmem:[#allocation5 + $0x70] sm:$0xff] }
 0x689   :  { %2197 = vmatprep.subr.mxu0 %v3554_v52  ;;  %2268 = vmatprep.subr.mxu1 %v3709_v61  ;;  %v3725_v52 = vld [vmem:[#allocation5 + $0x58] sm:$0xff] }
 0x68a   :  { %2198 = vmatpush1.msra.mxu0 %v3558_v5  ;;  %2269 = vmatpush1.msra.mxu1 %v3713_v63  ;;  %v3729_v5 = vld [vmem:[#allocation5 + $0x50] sm:$0xff] }
 0x68b   :  { %2199 = vmatprep.subr.mxu0 %v3562_v9  ;;  %2270 = vmatprep.subr.mxu1 %v3717_v2  ;;  %v3733_v9 = vld [vmem:[#allocation5 + $0x38] sm:$0xff] }
 0x68c   :  { %2200 = vmatpush1.msra.mxu0 %v3566_v11  ;;  %2271 = vmatpush1.msra.mxu1 %v3721_v47  ;;  %v3737_v11 = vld [vmem:[#allocation5 + $0x30] sm:$0xff] }
 0x68d   :  { %2201 = vmatprep.subr.mxu0 %v3570_v43  ;;  %2272 = vmatprep.subr.mxu1 %v3725_v52  ;;  %v3741_v43 = vld [vmem:[#allocation5 + $0x18] sm:$0xff] }
 0x68e   :  { %2202 = vmatpush1.msra.mxu0 %v3574_v35  ;;  %2273 = vmatpush1.msra.mxu1 %v3729_v5  ;;  %v3746_v35 = vld [vmem:[#allocation5 + $0x10] sm:$0xff] }
 0x68f   :  { %2203 = vmatprep.subr.mxu0 %v3578_v58  ;;  %2274 = vmatprep.subr.mxu1 %v3733_v9 }
 0x690   :  { %2204 = vmatpush1.msra.mxu0 %v3582_v33  ;;  %2275 = vmatpush1.msra.mxu1 %v3737_v11 }
 0x691   :  { %2205 = vmatprep.subr.mxu0 %v3586_v38  ;;  %2276 = vmatprep.subr.mxu1 %v3741_v43 }
 0x692   :  { %2206 = vmatpush1.msra.mxu0 %v3590_v21  ;;  %2239 = vmatprep.mubr.f32.mxu0 %v4081_v55  ;;  %v4108_v21 = vmov 1  }
 0x693   :  { %2277 = vmatpush1.msra.mxu1 %v3746_v35  ;;  %2310 = vmatprep.mubr.f32.mxu1 %v4081_v55 }
 0x694   :  { %2363 = vmatprep.subr.mxu0 %v3597_v20 }
 0x733   :  { %v2124_v58 = vpop.f32.mrf.mxu1  ;;  %v2053_v25 = vpop.f32.mrf.mxu0 }
 0x734   :  { %v2054_v17 = vadd.f32 %v2053_v25, %v3218_v56 }
 0x735   :  { %v2126_v33 = vpop.f32.mrf.mxu1  ;;  %v2055_v30 = vpop.f32.mrf.mxu0 }
 0x736   :  { %v2127_v38 = vadd.f32 %v2126_v33, %v4098_v45 }
 0x738   :  { %v3753_v14 = vadd.f32 %v2127_v38, %v4107_v4 }
 0x73a   :  { %2135 = vperm.xlu1 %2553, %v3753_v14  }
 0x73e   :  { %2555 = vset.pattern.permute.xlu1 %v4108_v21 }
 0x73f   :  { %2145 = vperm.xlu1 %2555, %v3753_v14  }
 0x7b5   :  { %v2136_v28 = vpop.permute.xlu1 %2135 }
 0x7b6   :  { %v2138_v18 = vmul.f32 %v2136_v28, %v4109_v62  ;;  %v2139_v20 = vmul.f32 %v2136_v28, %v4110_v16  ;;  %v2056_v62 = vadd.f32 %v2055_v30, %v3223_v40  ;;  %v2140_v25 = vmul.f32 %v2136_v28, %v3352_v12 }
 0x7b8   :  { %v2141_v1 = vadd.f32 %v2138_v18, %v4111_v31  ;;  %v2142_v51 = vadd.f32 %v2139_v20, %v4113_v49  ;;  %v2125_v20 = vadd.f32 %v2124_v58, %v3234_v36 }
 0x7ba   :  { %v2146_v15 = vpop.permute.xlu1 %2145 }
 0x7bb   :  { %v2148_v60 = vmul.f32 %v2146_v15, %v4112_v50  ;;  %v2149_v7 = vmul.f32 %v2146_v15, %v3342_v54 }
 0x7bd   :  { %v2151_v42 = vadd.f32 %v2148_v60, %v2141_v1  ;;  %v2152_v33 = vadd.f32 %v2149_v7, %v2142_v51  ;;  %v2150_v1 = vmul.f32 %v2146_v15, %v3358_v10  ;;  %v4123_v15 = vld [vmem:[#allocation53_spill] sm:$0xff] }
 0x7bf   :  { %v2154_v27 = vadd.f32 %v2151_v42, %v2054_v17  ;;  %v2155_v21 = vadd.f32 %v2152_v33, %v2056_v62  ;;  %v4114_v17 = vld [vmem:[#allocation61_spill] sm:$0xff] }
 0x7c0   :  { %v2143_v7 = vadd.f32 %v2140_v25, %v4114_v17 }
 0x7c1   :  { %v2514_v38 = vmul.f32 -1.442695, %v2154_v27  ;;  %v2515_v16 = vmul.f32 -1.442695, %v2155_v21 }
 0x7c2   :  { %v2153_v49 = vadd.f32 %v2150_v1, %v2143_v7 }
 0x7c3   :  { %2598 = vpow2.f32 %v2514_v38 }
 0x7c4   :  { %2600 = vpow2.f32 %v2515_v16 }
 0x7d0   :  { %v2599_v18 = vpop.eup %2598 }
 0x7d1   :  { %v2162_v31 = vadd.f32 1.0, %v2599_v18  ;;  %v2601_v50 = vpop.eup %2600  ;;  %v4124_v18 = vld [vmem:[#allocation66_spill] sm:$0xff] }
 0x7d2   :  { %v2163_v60 = vadd.f32 1.0, %v2601_v50 }
 0x7d3   :  { %2602 = vrcp.f32 %v2162_v31 }
 0x7d4   :  { %2604 = vrcp.f32 %v2163_v60 }
 0x7e0   :  { %v2603_v42 = vpop.eup %2602 }
 0x7e1   :  { %v2168_v51 = vmul.f32 %v2603_v42, %v2125_v20  ;;  %v2605_v21 = vpop.eup %2604 }
 0x7e2   :  { %v2171_v16 = vsub.f32 1.0, %v2605_v21  ;;  %v2173_v33 = vmul.f32 %v2605_v21, %v3620_v8 }
 0x7e3   :  { %v2169_v62 = vadd.f32 %v2168_v51, %v2153_v49 }
 0x7e5   :  { %2606 = vtanh.f32 %v2169_v62 }
 0x7f2   :  { %v2607_v27 = vpop.eup %2606 }
 0x7f3   :  { %v2172_v30 = vmul.f32 %v2607_v27, %v2171_v16 }
 0x7f5   :  { %v3771_v28 = vadd.f32 %v2173_v33, %v2172_v30  ;;  %v4125_v33 = vlaneseq }
 0x7f7   :  { %2240 = vmatmul.mubr.f32.vlgmr.msra.gmra.mxu0 %v3771_v28  ;;  %2311 = vmatmul.mubr.f32.vlgmr.msra.gmra.mxu1 %v3771_v28 }
 0x7f8   :  { %2364 = vmatpush1.msra.mxu0 %v3625_v3  ;;  %2427 = vmatprep.mubr.f32.mxu0 %v4081_v55 }
 0x7f9   :  { %2365 = vmatprep.subr.mxu0 %v3629_v0 }
 0x7fa   :  { %2366 = vmatpush1.msra.mxu0 %v3633_v24 }
 0x7fb   :  { %2367 = vmatprep.subr.mxu0 %v3637_v46  ;;  %v4115_v46 = vld [vmem:[#allocation15_spill] sm:$0xff] }
 0x7fc   :  { %2368 = vmatpush1.msra.mxu0 %v3641_v22  ;;  %v4116_v22 = vmov 1  }
 0x7fd   :  { %2369 = vmatprep.subr.mxu0 %v3645_v19  ;;  %v146_v19 = vld [vmem:[%s3843_s5 + $0x10] sm:$0x3]  ;;  %s2741_s5 = smov 10  }
 0x7fe   :  { %2370 = vmatpush1.msra.mxu0 %v3649_v13  ;;  %v4117_v13 = vld [vmem:[#allocation64_spill] sm:$0xff]  ;;  %v401_v50 = vrot.slane %v146_v19, %v4123_v15 }
 0x7ff   :  { %2371 = vmatprep.subr.mxu0 %v3653_v23  ;;  %v397_v23 = vrot.slane %v146_v19, %v4117_v13 }
 0x800   :  { %2372 = vmatpush1.msra.mxu0 %v3657_v6 }
 0x801   :  { %2373 = vmatprep.subr.mxu0 %v3661_v26 }
 0x802   :  { %2374 = vmatpush1.msra.mxu0 %v3665_v29  ;;  %v4118_v29 = vld [vmem:[#allocation12_spill] sm:$0xff] }
 0x803   :  { %2375 = vmatprep.subr.mxu0 %v3669_v32 }
 0x804   :  { %2376 = vmatpush1.msra.mxu0 %v3673_v34 }
 0x805   :  { %2377 = vmatprep.subr.mxu0 %v3677_v37  ;;  %v4119_v37 = vld [vmem:[#allocation13_spill] sm:$0xff] }
 0x806   :  { %2378 = vmatpush1.msra.mxu0 %v3681_v39 }
 0x807   :  { %2379 = vmatprep.subr.mxu0 %v3685_v41  ;;  %v4120_v41 = vld [vmem:[#allocation65_spill] sm:$0xff] }
 0x808   :  { %2380 = vmatpush1.msra.mxu0 %v3689_v44  ;;  %v1115_v44 = vadd.f32 %v4120_v41, %v397_v23 }
 0x809   :  { %2381 = vmatprep.subr.mxu0 %v3693_v48  ;;  %v4121_v48 = vld [vmem:[#allocation14_spill] sm:$0xff] }
 0x80a   :  { %2382 = vmatpush1.msra.mxu0 %v3697_v53 }
 0x80b   :  { %2383 = vmatprep.subr.mxu0 %v3701_v57  ;;  %v4122_v57 = vld [vmem:[#allocation63_spill] sm:$0xff] }
 0x80c   :  { %2384 = vmatpush1.msra.mxu0 %v3705_v59 }
 0x80d   :  { %2385 = vmatprep.subr.mxu0 %v3709_v61 }
 0x80e   :  { %2386 = vmatpush1.msra.mxu0 %v3713_v63 }
 0x80f   :  { %2387 = vmatprep.subr.mxu0 %v3717_v2 }
 0x810   :  { %2388 = vmatpush1.msra.mxu0 %v3721_v47 }
 0x811   :  { %2389 = vmatprep.subr.mxu0 %v3725_v52 }
 0x812   :  { %2390 = vmatpush1.msra.mxu0 %v3729_v5 }
 0x813   :  { %2391 = vmatprep.subr.mxu0 %v3733_v9 }
 0x814   :  { %2392 = vmatpush1.msra.mxu0 %v3737_v11 }
 0x815   :  { %2393 = vmatprep.subr.mxu0 %v3741_v43 }
 0x816   :  { %2394 = vmatpush1.msra.mxu0 %v3746_v35 }
 0x8b7   :  { %v2312_v8 = vpop.f32.mrf.mxu1  ;;  %v2241_v34 = vpop.f32.mrf.mxu0 }
 0x8b8   :  { %v2242_v61 = vadd.f32 %v2241_v34, %v3218_v56  ;;  %v2313_v1 = vadd.f32 %v2312_v8, %v3234_v36  ;;  %v2461_v8 = vand.u32 127, %v4125_v33 }
 0x8b9   :  { %v2314_v3 = vpop.f32.mrf.mxu1  ;;  %v2243_v5 = vpop.f32.mrf.mxu0 }
 0x8ba   :  { %v2315_v0 = vadd.f32 %v2314_v3, %v4098_v45  ;;  %v2244_v43 = vadd.f32 %v2243_v5, %v3223_v40 }
 0x8bc   :  { %v2317_v24 = vadd.f32 %v2315_v0, %v3753_v14  ;;  %v2462_v0 = vand.u32 1, %v2461_v8 }
 0x8be   :  { %2333 = vperm.xlu1 %2555, %v2317_v24   ;;  %2323 = vperm.xlu0 %2556, %v2317_v24   ;;  %vm2463_vm9 = vcmp.eq.s32.totalorder %v2462_v0, 0 }
 0x8c2   :  { %2434 = vrot.lane.b32.xlu1 %v4115_v46, %s2737_s2  ;;  %2437 = vrot.lane.b32.xlu0 %v4107_v4, %s2738_s30  ;;  %v4126_v46 = vld [vmem:[#allocation11_spill] sm:$0xff] }
 0x8c3   :  { %2557 = vset.pattern.permute.xlu0 %v4116_v22 }
 0x8c6   :  { %2440 = vrot.lane.b32.xlu1 %v3753_v14, %s2739_s7  ;;  %2443 = vrot.lane.b32.xlu0 %v2317_v24, %s2740_s8 }
 0x939   :  { %v2334_v6 = vpop.permute.xlu1 %2333  ;;  %v2324_v26 = vpop.permute.xlu0 %2323 }
 0x93a   :  { %v2326_v32 = vmul.f32 %v2324_v26, %v4118_v29  ;;  %v2327_v39 = vmul.f32 %v2324_v26, %v4119_v37  ;;  %v2336_v53 = vmul.f32 %v2334_v6, %v4121_v48  ;;  %v2337_v47 = vmul.f32 %v2334_v6, %v3342_v54 }
 0x93b   :  { %v2328_v56 = vmul.f32 %v2324_v26, %v3352_v12  ;;  %v1117_v54 = vadd.f32 %v4124_v18, %v401_v50  ;;  %v2338_v40 = vmul.f32 %v2334_v6, %v3358_v10 }
 0x93c   :  { %v2329_v59 = vadd.f32 %v2326_v32, %v4122_v57  ;;  %v2330_v63 = vadd.f32 %v2327_v39, %v1115_v44 }
 0x93d   :  { %v2331_v31 = vadd.f32 %v2328_v56, %v1117_v54  ;;  %v2435_v10 = vpop.permute.xlu1 %2434  ;;  %v2438_v3 = vpop.permute.xlu0 %2437 }
 0x93e   :  { %v2339_v2 = vadd.f32 %v2336_v53, %v2329_v59  ;;  %v2340_v9 = vadd.f32 %v2337_v47, %v2330_v63  ;;  %v2451_v22 = vsel %vm2450_vm6, %v4126_v46, %v2435_v10 }
 0x93f   :  { %v2341_v20 = vadd.f32 %v2338_v40, %v2331_v31  ;;  %v2453_v19 = vsel %vm2452_vm7, %v2451_v22, %v2438_v3 }
 0x940   :  { %v2342_v52 = vadd.f32 %v2339_v2, %v2242_v61  ;;  %v2343_v35 = vadd.f32 %v2340_v9, %v2244_v43 }
 0x941   :  { %v2444_v23 = vpop.permute.xlu0 %2443 }
 0x942   :  { %v2516_v11 = vmul.f32 -1.442695, %v2342_v52  ;;  %v2517_v58 = vmul.f32 -1.442695, %v2343_v35 }
 0x944   :  { %2608 = vpow2.f32 %v2516_v11 }
 0x945   :  { %2610 = vpow2.f32 %v2517_v58 }
 0x951   :  { %v2609_v4 = vpop.eup %2608 }
 0x952   :  { %v2350_v14 = vadd.f32 1.0, %v2609_v4  ;;  %v2611_v38 = vpop.eup %2610 }
 0x953   :  { %v2351_v25 = vadd.f32 1.0, %v2611_v38 }
 0x954   :  { %2612 = vrcp.f32 %v2350_v14 }
 0x955   :  { %2614 = vrcp.f32 %v2351_v25 }
 0x961   :  { %v2613_v60 = vpop.eup %2612 }
 0x962   :  { %v2356_v17 = vmul.f32 %v2613_v60, %v2313_v1  ;;  %v2615_v42 = vpop.eup %2614 }
 0x963   :  { %v2359_v49 = vsub.f32 1.0, %v2615_v42  ;;  %v2361_v12 = vmul.f32 %v2615_v42, %v3771_v28  ;;  %v2441_v28 = vpop.permute.xlu1 %2440 }
 0x964   :  { %v2357_v7 = vadd.f32 %v2356_v17, %v2341_v20  ;;  %v2455_v13 = vsel %vm2454_vm8, %v2453_v19, %v2441_v28 }
 0x966   :  { %2616 = vtanh.f32 %v2357_v7 }
 0x973   :  { %v2617_v51 = vpop.eup %2616 }
 0x974   :  { %v2360_v62 = vmul.f32 %v2617_v51, %v2359_v49 }
 0x976   :  { %v2362_v21 = vadd.f32 %v2361_v12, %v2360_v62 }
 0x978   :  { %2428 = vmatmul.mubr.f32.vlgmr.msra.gmra.mxu0 %v2362_v21 }
 0xa38   :  { %v2429_v16 = vpop.f32.mrf.mxu0 }
 0xa3a   :  { %v2430_v27 = vpop.f32.mrf.mxu0 }
 0xa3b   :  { %v2431_v36 = vadd.f32 %v2430_v27, %v4098_v45  ;;  %v2464_v45 = vsel %vm2463_vm9, 1.3, %v4081_v55 }
 0xa3d   :  { %v2433_v30 = vadd.f32 %v2431_v36, %v2317_v24  ;;  %v2457_v24 = vsel %vm2456_vm10, %v2455_v13, %v2444_v23 }
 0xa3f   :  { %2447 = vrot.lane.b32.xlu1 %v2433_v30, %s2741_s5 }
 0xab1   :  { %v2448_v6 = vpop.permute.xlu1 %2447 }
 0xab2   :  { %v2459_v26 = vsel %vm2458_vm11, %v2457_v24, %v2448_v6 }
 0xab3   :  { %v2465_v29 = vsub.f32 %v2459_v26, %v2464_v45 }
 0xab5   :  { %2467 = vst.msk [vmem:[%s3844_s6] sm:$0xff] %vm2466_vm12, %v2465_v29 }
 0xab6   :  { %2472 = vsyncpa [#allocation4], 1 }
 0xab7   :  { %2473 = vsyncpa [#allocation6], 1 }

</bundles_post_ra>
